<compile_context>
chip_gen: v6e
topology: v6e:2x2x1
jax: 0.10.0
libtpu: 0.0.40
codegen_flags: <defaults>
</compile_context>

<pallas_src>
import functools

import numpy as np

import jax
import jax.numpy as jnp
from jax.experimental import pallas as pl
from jax.experimental.pallas import tpu as pltpu

MXU_DTYPE = jnp.bfloat16      # matmul-input dtype (accumulation stays f32)
ACT_DTYPE = jnp.bfloat16      # activation-scratch dtype
CHANS = (1, 16, 32, 64)       # channel progression fixed by the module
NUM_CLASSES = 7
OUT_LANES = 128               # fc2 output padded to a lane-dense store


# ----------------------------------------------------------------------------
# Fused kernel
# ----------------------------------------------------------------------------
def _fused_cnn_kernel(NB, H, W,
                      image_ref, beam_ref,
                      bw1_ref, bb1_ref, bw2_ref, bb2_ref, bw3_ref, bb3_ref,
                      w1p_ref, w1b_ref, b1_ref, w2_ref, b2_ref,
                      out_ref,
                      act1, act2, act3):
    f32 = jnp.float32
    c0, c1, c2, c3 = CHANS

    # ---- stage 0: image (H, NB, W) -> row-padded act1, row = h*NB + n -------
    act1[pl.ds(0, NB), :] = jnp.zeros((NB, W * c0), ACT_DTYPE)
    act1[pl.ds(NB, H * NB), :] = (
        image_ref[...].reshape(H * NB, W * c0).astype(ACT_DTYPE))
    act1[pl.ds((H + 1) * NB, NB), :] = jnp.zeros((NB, W * c0), ACT_DTYPE)

    # ---- one conv3x3(pad=1) + ReLU + maxpool2x2 layer ------------------------
    # src layout: ((h_in+2)*NB, w_in*cin), row = (h+1)*NB + n, rows 0 / h_in+1
    # are zeros (row padding only; column boundary is folded into the weights).
    def conv_relu_pool(src_ref, w_ref, b_ref, h_in, wo, cout, dst_ref):
        ho = h_in // 2
        lanes = wo * cout                              # 128 at all three layers
        # Merged-tap LHS: three contiguous reads become lane-adjacent blocks;
        # one MXU matmul per layer with K = 3*w_in*cin.
        lhs = jnp.concatenate(
            [src_ref[pl.ds(dy * NB, h_in * NB), :] for dy in range(3)], axis=1)
        pre = jnp.dot(lhs, w_ref[...],
                      preferred_element_type=f32)      # (h_in*NB, 2*lanes)
        # 2x2 maxpool: split rows (h*NB+n) -> (p, h%2, n), max over h parity,
        # then max over the two lane halves (w-pool positions).
        pre4 = pre.reshape(ho, 2, NB, 2 * lanes)
        hmax = jnp.maximum(pre4[:, 0], pre4[:, 1])     # (ho, NB, 2*lanes)
        pooled = jnp.maximum(hmax[..., :lanes], hmax[..., lanes:])
        pooled = pooled.reshape(ho * NB, lanes)
        # Per-channel bias + ReLU after the max (commutes: bias is constant
        # over the pooled window, ReLU is monotone).
        pooled = jnp.maximum(pooled + b_ref[...], 0.0)
        if dst_ref is None:                            # last conv: return feats
            return pooled                              # (ho*NB, lanes) f32
        dst_ref[pl.ds(0, NB), :] = jnp.zeros((NB, lanes), ACT_DTYPE)
        dst_ref[pl.ds(NB, ho * NB), :] = pooled.astype(ACT_DTYPE)
        dst_ref[pl.ds((ho + 1) * NB, NB), :] = jnp.zeros((NB, lanes), ACT_DTYPE)
        return None

    conv_relu_pool(act1, bw1_ref, bb1_ref, H, W // 2, c1, act2)
    conv_relu_pool(act2, bw2_ref, bb2_ref, H // 2, W // 4, c2, act3)
    feat = conv_relu_pool(act3, bw3_ref, bb3_ref, H // 4, W // 8, c3, None)

    # ---- head: fc1 over VMEM-resident features + beam, ReLU, fc2 ------------
    h3 = H // 8
    acc = jnp.dot(beam_ref[...].astype(MXU_DTYPE), w1b_ref[...],
                  preferred_element_type=f32)          # (NB, 128)
    for p in range(h3):                                # contiguous (NB,128) rows
        fp = feat[p * NB:(p + 1) * NB, :]
        acc = acc + jnp.dot(fp.astype(MXU_DTYPE), w1p_ref[p],
                            preferred_element_type=f32)
    hidden = jnp.maximum(acc + b1_ref[...], 0.0)
    # TODO(synk): nn.Dropout(p=0.2) is implemented as eval-mode identity.
    logits = jnp.dot(hidden.astype(MXU_DTYPE), w2_ref[...],
                     preferred_element_type=f32) + b2_ref[...]
    out_ref[...] = logits.astype(out_ref.dtype)        # lane-dense (NB, 128)


# ----------------------------------------------------------------------------
# Wrapper
# ----------------------------------------------------------------------------
def _default_batch_block(n):
    if n <= 32:
        return n
    for nb in (32, 24, 16, 8):                         # keep grid >= 2 for N > 32
        if n % nb == 0:
            return nb
    return n


def cnn_w_beam_forward(image, beam, prepared, *, batch_block=None,
                       num_classes=NUM_CLASSES):
    """image: (N, 1, H, W) f32 NCHW, beam: (N, 3) f32 -> logits (N, 7) f32."""
    N, cin, H, W = image.shape
    assert cin == 1 and H % 8 == 0 and W % 8 == 0, "needs 3 levels of 2x2 pool"
    NB = batch_block if batch_block is not None else _default_batch_block(N)
    assert N % NB == 0
    assert NB == N or NB % 8 == 0, "batch block: whole batch or a multiple of 8"
    c0, c1, c2 = CHANS[0], CHANS[1], CHANS[2]

    # Layout plumbing outside the kernel: (N,1,H,W) -> (H, N, W) so the kernel's
    # batch-minor activation rows come straight from one block DMA + reshape.
    img_t = jnp.transpose(image.reshape(N, H, W), (1, 0, 2))

    weights = (prepared["bw1"], prepared["bb1"],
               prepared["bw2"], prepared["bb2"],
               prepared["bw3"], prepared["bb3"],
               prepared["w1p"], prepared["w1b"], prepared["b1"],
               prepared["w2"], prepared["b2"])

    def bcast(a):                                      # whole array, every step
        nd = a.ndim
        return pl.BlockSpec(a.shape, lambda i: (0,) * nd)

    grid_spec = pltpu.PrefetchScalarGridSpec(
        num_scalar_prefetch=0,
        grid=(N // NB,),                               # batch blocks
        in_specs=[pl.BlockSpec((H, NB, W), lambda i: (0, i, 0)),
                  pl.BlockSpec((NB, 3), lambda i: (i, 0))]
                 + [bcast(a) for a in weights],
        out_specs=pl.BlockSpec((NB, OUT_LANES), lambda i: (i, 0)),
        scratch_shapes=[
            pltpu.VMEM(((H + 2) * NB, W * c0), ACT_DTYPE),            # act1
            pltpu.VMEM(((H // 2 + 2) * NB, (W // 2) * c1), ACT_DTYPE),  # act2
            pltpu.VMEM(((H // 4 + 2) * NB, (W // 4) * c2), ACT_DTYPE),  # act3
        ])

    out = pl.pallas_call(
        functools.partial(_fused_cnn_kernel, NB, H, W),
        out_shape=jax.ShapeDtypeStruct((N, OUT_LANES), jnp.float32),
        grid_spec=grid_spec,
        compiler_params=pltpu.CompilerParams(
            dimension_semantics=("parallel",)),        # megacore / v7x sharding
    )(img_t, beam, *weights)
    return out[:, :num_classes]


# ----------------------------------------------------------------------------
# One-time parameter preparation (kernel-format weights)
# ----------------------------------------------------------------------------
def prepare_params(params, H, W):
    """Convert module-style params into the fused kernel's layout (run once)."""

    def banded(w_hwio, w_in):
        # (3,3,Cin,Cout) -> (3*w_in*Cin, 2*(w_in//2)*Cout) with the three
        # kernel-row (dy) taps stacked along K and the conv boundary (the
        # out-of-range dx taps) folded in by simply omitting those entries:
        #  out[dy*w_in*Cin + win*Cin + ci, j*(wo*Cout) + q*Cout + co]
        #    = w[dy,dx,ci,co]   where win = 2q + j + dx - 1, 0 <= win < w_in.
        w = np.asarray(w_hwio, np.float32)
        kh, kw, cin, cout = w.shape
        wo = w_in // 2
        m = np.zeros((kh, w_in, cin, 2, wo, cout), np.float32)
        for dy in range(kh):
            for j in range(2):                         # w position in the pool
                for dx in range(kw):
                    for q in range(wo):
                        win = 2 * q + j + dx - 1
                        if 0 <= win < w_in:
                            m[dy, win, :, j, q, :] = w[dy, dx]
        return jnp.asarray(m.reshape(kh * w_in * cin, 2 * wo * cout), MXU_DTYPE)

    def tiled_bias(b, wo):                             # lane order q*Cout + co
        return jnp.tile(b, wo).reshape(1, -1).astype(jnp.float32)

    h3, w3, c3 = H // 8, W // 8, CHANS[3]
    flat = c3 * h3 * w3
    w_fc1 = params["w_fc1"]
    hidden = w_fc1.shape[1]
    n_cls = params["w_fc2"].shape[1]
    # fc1 rows [0, flat) are in PyTorch NCHW-flatten order (c, h, w); permute
    # once into the kernel's per-row(h) x lane(w*C + c) feature order.
    w1p = (w_fc1[:flat].reshape(c3, h3, w3, hidden).transpose(1, 2, 0, 3)
           .reshape(h3, w3 * c3, hidden).astype(MXU_DTYPE))
    w2p = (jnp.zeros((hidden, OUT_LANES), jnp.float32)
           .at[:, :n_cls].set(params["w_fc2"]).astype(MXU_DTYPE))
    b2p = jnp.zeros((1, OUT_LANES), jnp.float32).at[0, :n_cls].set(params["b_fc2"])
    return {
        "bw1": banded(params["w_c1"], W),
        "bb1": tiled_bias(params["b_c1"], W // 2),
        "bw2": banded(params["w_c2"], W // 2),
        "bb2": tiled_bias(params["b_c2"], W // 4),
        "bw3": banded(params["w_c3"], W // 4),
        "bb3": tiled_bias(params["b_c3"], W // 8),
        "w1p": w1p,
        "w1b": w_fc1[flat:].astype(MXU_DTYPE),
        "b1": params["b_fc1"].reshape(1, -1).astype(jnp.float32),
        "w2": w2p,
        "b2": b2p,
    }


def init_params(key, flat_dim):
    ks = jax.random.split(key, 10)
    s = 0.1
    return {
        "w_c1": s * jax.random.normal(ks[0], (3, 3, 1, 16), jnp.float32),
        "b_c1": s * jax.random.normal(ks[1], (16,), jnp.float32),
        "w_c2": s * jax.random.normal(ks[2], (3, 3, 16, 32), jnp.float32),
        "b_c2": s * jax.random.normal(ks[3], (32,), jnp.float32),
        "w_c3": s * jax.random.normal(ks[4], (3, 3, 32, 64), jnp.float32),
        "b_c3": s * jax.random.normal(ks[5], (64,), jnp.float32),
        "w_fc1": s * jax.random.normal(ks[6], (flat_dim + 3, 128), jnp.float32),
        "b_fc1": s * jax.random.normal(ks[7], (128,), jnp.float32),
        "w_fc2": s * jax.random.normal(ks[8], (128, NUM_CLASSES), jnp.float32),
        "b_fc2": s * jax.random.normal(ks[9], (NUM_CLASSES,), jnp.float32),
    }


# ----------------------------------------------------------------------------
# Pure-JAX reference of the PyTorch module (for verification only)
# ----------------------------------------------------------------------------
def reference_forward(image, beam, params):
    def crp(x, w, b):
        y = jax.lax.conv_general_dilated(
            x, w, (1, 1), "SAME", dimension_numbers=("NCHW", "HWIO", "NCHW"))
        y = jnp.maximum(y + b[None, :, None, None], 0.0)
        return jax.lax.reduce_window(y, -jnp.inf, jax.lax.max,
                                     (1, 1, 2, 2), (1, 1, 2, 2), "VALID")

    x = crp(image, params["w_c1"], params["b_c1"])
    x = crp(x, params["w_c2"], params["b_c2"])
    x = crp(x, params["w_c3"], params["b_c3"])
    feat = x.reshape(x.shape[0], -1)                   # NCHW flatten (c, h, w)
    fb = jnp.concatenate([feat, beam], axis=1)
    h = jnp.maximum(fb @ params["w_fc1"] + params["b_fc1"], 0.0)
    return h @ params["w_fc2"] + params["b_fc2"]


if __name__ == "__main__":
    N, H, W = 32, 16, 16
    flat_dim = CHANS[3] * (H // 8) * (W // 8)          # 64 * 2 * 2 = 256

    key = jax.random.PRNGKey(0)
    k_img, k_beam, k_par = jax.random.split(key, 3)
    image = jax.random.normal(k_img, (N, 1, H, W), jnp.float32)
    beam = jax.random.normal(k_beam, (N, 3), jnp.float32)

    params = init_params(k_par, flat_dim)
    prepared = prepare_params(params, H, W)            # one-time weight lowering

    # batch_block=16 -> grid=2: batch blocks still pipeline / shard across the
    # two v7x TensorCores while keeping conv matmul M = 16*{16,8,4} rows.
    fwd = jax.jit(functools.partial(cnn_w_beam_forward, batch_block=16))
    logits = fwd(image, beam, prepared)
    jax.block_until_ready(logits)
    assert logits.shape == (N, NUM_CLASSES) and logits.dtype == jnp.float32

    ref = reference_forward(image, beam, params)
    np.testing.assert_allclose(np.asarray(logits), np.asarray(ref),
                               atol=0.1, rtol=0.1)     # bf16-matmul tolerance
    print("KERNEL_OK")
</pallas_src>

<mosaic_0001>
module attributes {stable_mosaic.version = 11 : i64} {
  func.func @_fused_cnn_kernel(%arg0: i32, %arg1: memref<16x16x16xf32, #tpu.memory_space<vmem>>, %arg2: memref<16x3xf32, #tpu.memory_space<vmem>>, %arg3: memref<48x256xbf16, #tpu.memory_space<vmem>>, %arg4: memref<1x128xf32, #tpu.memory_space<vmem>>, %arg5: memref<384x256xbf16, #tpu.memory_space<vmem>>, %arg6: memref<1x128xf32, #tpu.memory_space<vmem>>, %arg7: memref<384x256xbf16, #tpu.memory_space<vmem>>, %arg8: memref<1x128xf32, #tpu.memory_space<vmem>>, %arg9: memref<2x128x128xbf16, #tpu.memory_space<vmem>>, %arg10: memref<3x128xbf16, #tpu.memory_space<vmem>>, %arg11: memref<1x128xf32, #tpu.memory_space<vmem>>, %arg12: memref<128x128xbf16, #tpu.memory_space<vmem>>, %arg13: memref<1x128xf32, #tpu.memory_space<vmem>>, %arg14: memref<16x128xf32, #tpu.memory_space<vmem>>, %arg15: memref<288x16xbf16, #tpu.memory_space<vmem>>, %arg16: memref<160x128xbf16, #tpu.memory_space<vmem>>, %arg17: memref<96x128xbf16, #tpu.memory_space<vmem>>) attributes {dimension_semantics = [#tpu.dimension_semantics<parallel>], iteration_bounds = array<i64: 2>, scalar_prefetch = 0 : i64, scratch_operands = 3 : i64, tpu.core_type = #tpu.core_type<tc>, window_params = [{transform_indices = @transform_0, window_bounds = array<i64: 16, 16, 16>}, {transform_indices = @transform_1, window_bounds = array<i64: 16, 3>}, {pipeline_mode = #tpu.pipeline_mode<synchronous>, transform_indices = @transform_2, window_bounds = array<i64: 48, 256>}, {pipeline_mode = #tpu.pipeline_mode<synchronous>, transform_indices = @transform_3, window_bounds = array<i64: 1, 128>}, {pipeline_mode = #tpu.pipeline_mode<synchronous>, transform_indices = @transform_4, window_bounds = array<i64: 384, 256>}, {pipeline_mode = #tpu.pipeline_mode<synchronous>, transform_indices = @transform_5, window_bounds = array<i64: 1, 128>}, {pipeline_mode = #tpu.pipeline_mode<synchronous>, transform_indices = @transform_6, window_bounds = array<i64: 384, 256>}, {pipeline_mode = #tpu.pipeline_mode<synchronous>, transform_indices = @transform_7, window_bounds = array<i64: 1, 128>}, {pipeline_mode = #tpu.pipeline_mode<synchronous>, transform_indices = @transform_8, window_bounds = array<i64: 2, 128, 128>}, {pipeline_mode = #tpu.pipeline_mode<synchronous>, transform_indices = @transform_9, window_bounds = array<i64: 3, 128>}, {pipeline_mode = #tpu.pipeline_mode<synchronous>, transform_indices = @transform_10, window_bounds = array<i64: 1, 128>}, {pipeline_mode = #tpu.pipeline_mode<synchronous>, transform_indices = @transform_11, window_bounds = array<i64: 128, 128>}, {pipeline_mode = #tpu.pipeline_mode<synchronous>, transform_indices = @transform_12, window_bounds = array<i64: 1, 128>}, {transform_indices = @transform_13, window_bounds = array<i64: 16, 128>}]} {
    %cst = arith.constant 0.000000e+00 : bf16
    %0 = vector.broadcast %cst : bf16 to vector<16x16xbf16>
    %c0 = arith.constant 0 : index
    %c0_0 = arith.constant 0 : index
    %1 = vector.load %arg15[%c0, %c0_0] : memref<288x16xbf16, #tpu.memory_space<vmem>>, vector<16x16xbf16>
    tpu.vector_store %arg15[%c0, %c0_0], %0 {strides = array<i32>} : memref<288x16xbf16, #tpu.memory_space<vmem>>, vector<16x16xbf16>,
    %c0_1 = arith.constant 0 : index
    %c0_2 = arith.constant 0 : index
    %c0_3 = arith.constant 0 : index
    %2 = vector.load %arg1[%c0_1, %c0_2, %c0_3] : memref<16x16x16xf32, #tpu.memory_space<vmem>>, vector<16x16x16xf32>
    %3 = vector.shape_cast %2 : vector<16x16x16xf32> to vector<256x16xf32>
    %4 = arith.truncf %3 : vector<256x16xf32> to vector<256x16xbf16>
    %c16 = arith.constant 16 : index
    %c0_4 = arith.constant 0 : index
    %5 = vector.load %arg15[%c16, %c0_4] : memref<288x16xbf16, #tpu.memory_space<vmem>>, vector<256x16xbf16>
    tpu.vector_store %arg15[%c16, %c0_4], %4 {strides = array<i32>} : memref<288x16xbf16, #tpu.memory_space<vmem>>, vector<256x16xbf16>,
    %cst_5 = arith.constant 0.000000e+00 : bf16
    %6 = vector.broadcast %cst_5 : bf16 to vector<16x16xbf16>
    %c272 = arith.constant 272 : index
    %c0_6 = arith.constant 0 : index
    %7 = vector.load %arg15[%c272, %c0_6] : memref<288x16xbf16, #tpu.memory_space<vmem>>, vector<16x16xbf16>
    tpu.vector_store %arg15[%c272, %c0_6], %6 {strides = array<i32>} : memref<288x16xbf16, #tpu.memory_space<vmem>>, vector<16x16xbf16>,
    %c0_7 = arith.constant 0 : index
    %c0_8 = arith.constant 0 : index
    %8 = vector.load %arg15[%c0_7, %c0_8] : memref<288x16xbf16, #tpu.memory_space<vmem>>, vector<256x16xbf16>
    %c16_9 = arith.constant 16 : index
    %c0_10 = arith.constant 0 : index
    %9 = vector.load %arg15[%c16_9, %c0_10] : memref<288x16xbf16, #tpu.memory_space<vmem>>, vector<256x16xbf16>
    %c32 = arith.constant 32 : index
    %c0_11 = arith.constant 0 : index
    %10 = vector.load %arg15[%c32, %c0_11] : memref<288x16xbf16, #tpu.memory_space<vmem>>, vector<256x16xbf16>
    %11 = tpu.concatenate %8, %9, %10 in 1 : vector<256x16xbf16>, vector<256x16xbf16>, vector<256x16xbf16> -> vector<256x48xbf16>
    %c0_12 = arith.constant 0 : index
    %c0_13 = arith.constant 0 : index
    %12 = vector.load %arg3[%c0_12, %c0_13] : memref<48x256xbf16, #tpu.memory_space<vmem>>, vector<48x256xbf16>
    %cst_14 = arith.constant dense<0.000000e+00> : vector<256x256xf32>
    %13 = tpu.matmul %11, %12, %cst_14 {dimension_numbers = #tpu.dot_dimension_numbers<[1], [0], [0], [1], [0, 0, 1, 1], [], []>} : vector<256x48xbf16>, vector<48x256xbf16>, vector<256x256xf32> -> vector<256x256xf32>
    %14 = vector.shape_cast %13 : vector<256x256xf32> to vector<8x2x16x256xf32>
    %15 = vector.extract_strided_slice %14 {offsets = [0, 0, 0, 0], sizes = [8, 1, 16, 256], strides = [1, 1, 1, 1]} : vector<8x2x16x256xf32> to vector<8x1x16x256xf32>
    %16 = vector.shape_cast %15 : vector<8x1x16x256xf32> to vector<8x16x256xf32>
    %17 = vector.extract_strided_slice %14 {offsets = [0, 1, 0, 0], sizes = [8, 1, 16, 256], strides = [1, 1, 1, 1]} : vector<8x2x16x256xf32> to vector<8x1x16x256xf32>
    %18 = vector.shape_cast %17 : vector<8x1x16x256xf32> to vector<8x16x256xf32>
    %19 = arith.maximumf %16, %18 : vector<8x16x256xf32>
    %20 = vector.extract_strided_slice %19 {offsets = [0, 0, 0], sizes = [8, 16, 128], strides = [1, 1, 1]} : vector<8x16x256xf32> to vector<8x16x128xf32>
    %21 = vector.extract_strided_slice %19 {offsets = [0, 0, 128], sizes = [8, 16, 128], strides = [1, 1, 1]} : vector<8x16x256xf32> to vector<8x16x128xf32>
    %22 = arith.maximumf %20, %21 : vector<8x16x128xf32>
    %23 = vector.shape_cast %22 : vector<8x16x128xf32> to vector<128x128xf32>
    %c0_15 = arith.constant 0 : index
    %c0_16 = arith.constant 0 : index
    %24 = vector.load %arg4[%c0_15, %c0_16] : memref<1x128xf32, #tpu.memory_space<vmem>>, vector<1x128xf32>
    %25 = vector.broadcast %24 : vector<1x128xf32> to vector<128x128xf32>
    %26 = arith.addf %23, %25 : vector<128x128xf32>
    %cst_17 = arith.constant 0.000000e+00 : f32
    %27 = vector.broadcast %cst_17 : f32 to vector<128x128xf32>
    %28 = arith.maximumf %26, %27 : vector<128x128xf32>
    %cst_18 = arith.constant 0.000000e+00 : bf16
    %29 = vector.broadcast %cst_18 : bf16 to vector<16x128xbf16>
    %c0_19 = arith.constant 0 : index
    %c0_20 = arith.constant 0 : index
    %30 = vector.load %arg16[%c0_19, %c0_20] : memref<160x128xbf16, #tpu.memory_space<vmem>>, vector<16x128xbf16>
    tpu.vector_store %arg16[%c0_19, %c0_20], %29 {strides = array<i32>} : memref<160x128xbf16, #tpu.memory_space<vmem>>, vector<16x128xbf16>,
    %31 = arith.truncf %28 : vector<128x128xf32> to vector<128x128xbf16>
    %c16_21 = arith.constant 16 : index
    %c0_22 = arith.constant 0 : index
    %32 = vector.load %arg16[%c16_21, %c0_22] : memref<160x128xbf16, #tpu.memory_space<vmem>>, vector<128x128xbf16>
    tpu.vector_store %arg16[%c16_21, %c0_22], %31 {strides = array<i32>} : memref<160x128xbf16, #tpu.memory_space<vmem>>, vector<128x128xbf16>,
    %cst_23 = arith.constant 0.000000e+00 : bf16
    %33 = vector.broadcast %cst_23 : bf16 to vector<16x128xbf16>
    %c144 = arith.constant 144 : index
    %c0_24 = arith.constant 0 : index
    %34 = vector.load %arg16[%c144, %c0_24] : memref<160x128xbf16, #tpu.memory_space<vmem>>, vector<16x128xbf16>
    tpu.vector_store %arg16[%c144, %c0_24], %33 {strides = array<i32>} : memref<160x128xbf16, #tpu.memory_space<vmem>>, vector<16x128xbf16>,
    %c0_25 = arith.constant 0 : index
    %c0_26 = arith.constant 0 : index
    %35 = vector.load %arg16[%c0_25, %c0_26] : memref<160x128xbf16, #tpu.memory_space<vmem>>, vector<128x128xbf16>
    %c16_27 = arith.constant 16 : index
    %c0_28 = arith.constant 0 : index
    %36 = vector.load %arg16[%c16_27, %c0_28] : memref<160x128xbf16, #tpu.memory_space<vmem>>, vector<128x128xbf16>
    %c32_29 = arith.constant 32 : index
    %c0_30 = arith.constant 0 : index
    %37 = vector.load %arg16[%c32_29, %c0_30] : memref<160x128xbf16, #tpu.memory_space<vmem>>, vector<128x128xbf16>
    %38 = tpu.concatenate %35, %36, %37 in 1 : vector<128x128xbf16>, vector<128x128xbf16>, vector<128x128xbf16> -> vector<128x384xbf16>
    %c0_31 = arith.constant 0 : index
    %c0_32 = arith.constant 0 : index
    %39 = vector.load %arg5[%c0_31, %c0_32] : memref<384x256xbf16, #tpu.memory_space<vmem>>, vector<384x256xbf16>
    %cst_33 = arith.constant dense<0.000000e+00> : vector<128x256xf32>
    %40 = tpu.matmul %38, %39, %cst_33 {dimension_numbers = #tpu.dot_dimension_numbers<[1], [0], [0], [1], [0, 0, 1, 1], [], []>} : vector<128x384xbf16>, vector<384x256xbf16>, vector<128x256xf32> -> vector<128x256xf32>
    %41 = vector.shape_cast %40 : vector<128x256xf32> to vector<4x2x16x256xf32>
    %42 = vector.extract_strided_slice %41 {offsets = [0, 0, 0, 0], sizes = [4, 1, 16, 256], strides = [1, 1, 1, 1]} : vector<4x2x16x256xf32> to vector<4x1x16x256xf32>
    %43 = vector.shape_cast %42 : vector<4x1x16x256xf32> to vector<4x16x256xf32>
    %44 = vector.extract_strided_slice %41 {offsets = [0, 1, 0, 0], sizes = [4, 1, 16, 256], strides = [1, 1, 1, 1]} : vector<4x2x16x256xf32> to vector<4x1x16x256xf32>
    %45 = vector.shape_cast %44 : vector<4x1x16x256xf32> to vector<4x16x256xf32>
    %46 = arith.maximumf %43, %45 : vector<4x16x256xf32>
    %47 = vector.extract_strided_slice %46 {offsets = [0, 0, 0], sizes = [4, 16, 128], strides = [1, 1, 1]} : vector<4x16x256xf32> to vector<4x16x128xf32>
    %48 = vector.extract_strided_slice %46 {offsets = [0, 0, 128], sizes = [4, 16, 128], strides = [1, 1, 1]} : vector<4x16x256xf32> to vector<4x16x128xf32>
    %49 = arith.maximumf %47, %48 : vector<4x16x128xf32>
    %50 = vector.shape_cast %49 : vector<4x16x128xf32> to vector<64x128xf32>
    %c0_34 = arith.constant 0 : index
    %c0_35 = arith.constant 0 : index
    %51 = vector.load %arg6[%c0_34, %c0_35] : memref<1x128xf32, #tpu.memory_space<vmem>>, vector<1x128xf32>
    %52 = vector.broadcast %51 : vector<1x128xf32> to vector<64x128xf32>
    %53 = arith.addf %50, %52 : vector<64x128xf32>
    %cst_36 = arith.constant 0.000000e+00 : f32
    %54 = vector.broadcast %cst_36 : f32 to vector<64x128xf32>
    %55 = arith.maximumf %53, %54 : vector<64x128xf32>
    %cst_37 = arith.constant 0.000000e+00 : bf16
    %56 = vector.broadcast %cst_37 : bf16 to vector<16x128xbf16>
    %c0_38 = arith.constant 0 : index
    %c0_39 = arith.constant 0 : index
    %57 = vector.load %arg17[%c0_38, %c0_39] : memref<96x128xbf16, #tpu.memory_space<vmem>>, vector<16x128xbf16>
    tpu.vector_store %arg17[%c0_38, %c0_39], %56 {strides = array<i32>} : memref<96x128xbf16, #tpu.memory_space<vmem>>, vector<16x128xbf16>,
    %58 = arith.truncf %55 : vector<64x128xf32> to vector<64x128xbf16>
    %c16_40 = arith.constant 16 : index
    %c0_41 = arith.constant 0 : index
    %59 = vector.load %arg17[%c16_40, %c0_41] : memref<96x128xbf16, #tpu.memory_space<vmem>>, vector<64x128xbf16>
    tpu.vector_store %arg17[%c16_40, %c0_41], %58 {strides = array<i32>} : memref<96x128xbf16, #tpu.memory_space<vmem>>, vector<64x128xbf16>,
    %cst_42 = arith.constant 0.000000e+00 : bf16
    %60 = vector.broadcast %cst_42 : bf16 to vector<16x128xbf16>
    %c80 = arith.constant 80 : index
    %c0_43 = arith.constant 0 : index
    %61 = vector.load %arg17[%c80, %c0_43] : memref<96x128xbf16, #tpu.memory_space<vmem>>, vector<16x128xbf16>
    tpu.vector_store %arg17[%c80, %c0_43], %60 {strides = array<i32>} : memref<96x128xbf16, #tpu.memory_space<vmem>>, vector<16x128xbf16>,
    %c0_44 = arith.constant 0 : index
    %c0_45 = arith.constant 0 : index
    %62 = vector.load %arg17[%c0_44, %c0_45] : memref<96x128xbf16, #tpu.memory_space<vmem>>, vector<64x128xbf16>
    %c16_46 = arith.constant 16 : index
    %c0_47 = arith.constant 0 : index
    %63 = vector.load %arg17[%c16_46, %c0_47] : memref<96x128xbf16, #tpu.memory_space<vmem>>, vector<64x128xbf16>
    %c32_48 = arith.constant 32 : index
    %c0_49 = arith.constant 0 : index
    %64 = vector.load %arg17[%c32_48, %c0_49] : memref<96x128xbf16, #tpu.memory_space<vmem>>, vector<64x128xbf16>
    %65 = tpu.concatenate %62, %63, %64 in 1 : vector<64x128xbf16>, vector<64x128xbf16>, vector<64x128xbf16> -> vector<64x384xbf16>
    %c0_50 = arith.constant 0 : index
    %c0_51 = arith.constant 0 : index
    %66 = vector.load %arg7[%c0_50, %c0_51] : memref<384x256xbf16, #tpu.memory_space<vmem>>, vector<384x256xbf16>
    %cst_52 = arith.constant dense<0.000000e+00> : vector<64x256xf32>
    %67 = tpu.matmul %65, %66, %cst_52 {dimension_numbers = #tpu.dot_dimension_numbers<[1], [0], [0], [1], [0, 0, 1, 1], [], []>} : vector<64x384xbf16>, vector<384x256xbf16>, vector<64x256xf32> -> vector<64x256xf32>
    %68 = vector.shape_cast %67 : vector<64x256xf32> to vector<2x2x16x256xf32>
    %69 = vector.extract_strided_slice %68 {offsets = [0, 0, 0, 0], sizes = [2, 1, 16, 256], strides = [1, 1, 1, 1]} : vector<2x2x16x256xf32> to vector<2x1x16x256xf32>
    %70 = vector.shape_cast %69 : vector<2x1x16x256xf32> to vector<2x16x256xf32>
    %71 = vector.extract_strided_slice %68 {offsets = [0, 1, 0, 0], sizes = [2, 1, 16, 256], strides = [1, 1, 1, 1]} : vector<2x2x16x256xf32> to vector<2x1x16x256xf32>
    %72 = vector.shape_cast %71 : vector<2x1x16x256xf32> to vector<2x16x256xf32>
    %73 = arith.maximumf %70, %72 : vector<2x16x256xf32>
    %74 = vector.extract_strided_slice %73 {offsets = [0, 0, 0], sizes = [2, 16, 128], strides = [1, 1, 1]} : vector<2x16x256xf32> to vector<2x16x128xf32>
    %75 = vector.extract_strided_slice %73 {offsets = [0, 0, 128], sizes = [2, 16, 128], strides = [1, 1, 1]} : vector<2x16x256xf32> to vector<2x16x128xf32>
    %76 = arith.maximumf %74, %75 : vector<2x16x128xf32>
    %77 = vector.shape_cast %76 : vector<2x16x128xf32> to vector<32x128xf32>
    %c0_53 = arith.constant 0 : index
    %c0_54 = arith.constant 0 : index
    %78 = vector.load %arg8[%c0_53, %c0_54] : memref<1x128xf32, #tpu.memory_space<vmem>>, vector<1x128xf32>
    %79 = vector.broadcast %78 : vector<1x128xf32> to vector<32x128xf32>
    %80 = arith.addf %77, %79 : vector<32x128xf32>
    %cst_55 = arith.constant 0.000000e+00 : f32
    %81 = vector.broadcast %cst_55 : f32 to vector<32x128xf32>
    %82 = arith.maximumf %80, %81 : vector<32x128xf32>
    %c0_56 = arith.constant 0 : index
    %c0_57 = arith.constant 0 : index
    %83 = vector.load %arg2[%c0_56, %c0_57] : memref<16x3xf32, #tpu.memory_space<vmem>>, vector<16x3xf32>
    %84 = arith.truncf %83 : vector<16x3xf32> to vector<16x3xbf16>
    %c0_58 = arith.constant 0 : index
    %c0_59 = arith.constant 0 : index
    %85 = vector.load %arg10[%c0_58, %c0_59] : memref<3x128xbf16, #tpu.memory_space<vmem>>, vector<3x128xbf16>
    %cst_60 = arith.constant dense<0.000000e+00> : vector<16x128xf32>
    %86 = tpu.matmul %84, %85, %cst_60 {dimension_numbers = #tpu.dot_dimension_numbers<[1], [0], [0], [1], [0, 0, 1, 1], [], []>} : vector<16x3xbf16>, vector<3x128xbf16>, vector<16x128xf32> -> vector<16x128xf32>
    %87 = vector.extract_strided_slice %82 {offsets = [0, 0], sizes = [16, 128], strides = [1, 1]} : vector<32x128xf32> to vector<16x128xf32>
    %88 = arith.truncf %87 : vector<16x128xf32> to vector<16x128xbf16>
    %c0_61 = arith.constant 0 : index
    %c0_62 = arith.constant 0 : index
    %c0_63 = arith.constant 0 : index
    %89 = vector.load %arg9[%c0_61, %c0_62, %c0_63] : memref<2x128x128xbf16, #tpu.memory_space<vmem>>, vector<1x128x128xbf16>
    %90 = vector.shape_cast %89 : vector<1x128x128xbf16> to vector<128x128xbf16>
    %cst_64 = arith.constant dense<0.000000e+00> : vector<16x128xf32>
    %91 = tpu.matmul %88, %90, %cst_64 {dimension_numbers = #tpu.dot_dimension_numbers<[1], [0], [0], [1], [0, 0, 1, 1], [], []>} : vector<16x128xbf16>, vector<128x128xbf16>, vector<16x128xf32> -> vector<16x128xf32>
    %92 = arith.addf %86, %91 : vector<16x128xf32>
    %93 = vector.extract_strided_slice %82 {offsets = [16, 0], sizes = [16, 128], strides = [1, 1]} : vector<32x128xf32> to vector<16x128xf32>
    %94 = arith.truncf %93 : vector<16x128xf32> to vector<16x128xbf16>
    %c1 = arith.constant 1 : index
    %c0_65 = arith.constant 0 : index
    %c0_66 = arith.constant 0 : index
    %95 = vector.load %arg9[%c1, %c0_65, %c0_66] : memref<2x128x128xbf16, #tpu.memory_space<vmem>>, vector<1x128x128xbf16>
    %96 = vector.shape_cast %95 : vector<1x128x128xbf16> to vector<128x128xbf16>
    %cst_67 = arith.constant dense<0.000000e+00> : vector<16x128xf32>
    %97 = tpu.matmul %94, %96, %cst_67 {dimension_numbers = #tpu.dot_dimension_numbers<[1], [0], [0], [1], [0, 0, 1, 1], [], []>} : vector<16x128xbf16>, vector<128x128xbf16>, vector<16x128xf32> -> vector<16x128xf32>
    %98 = arith.addf %92, %97 : vector<16x128xf32>
    %c0_68 = arith.constant 0 : index
    %c0_69 = arith.constant 0 : index
    %99 = vector.load %arg11[%c0_68, %c0_69] : memref<1x128xf32, #tpu.memory_space<vmem>>, vector<1x128xf32>
    %100 = vector.broadcast %99 : vector<1x128xf32> to vector<16x128xf32>
    %101 = arith.addf %98, %100 : vector<16x128xf32>
    %cst_70 = arith.constant 0.000000e+00 : f32
    %102 = vector.broadcast %cst_70 : f32 to vector<16x128xf32>
    %103 = arith.maximumf %101, %102 : vector<16x128xf32>
    %104 = arith.truncf %103 : vector<16x128xf32> to vector<16x128xbf16>
    %c0_71 = arith.constant 0 : index
    %c0_72 = arith.constant 0 : index
    %105 = vector.load %arg12[%c0_71, %c0_72] : memref<128x128xbf16, #tpu.memory_space<vmem>>, vector<128x128xbf16>
    %cst_73 = arith.constant dense<0.000000e+00> : vector<16x128xf32>
    %106 = tpu.matmul %104, %105, %cst_73 {dimension_numbers = #tpu.dot_dimension_numbers<[1], [0], [0], [1], [0, 0, 1, 1], [], []>} : vector<16x128xbf16>, vector<128x128xbf16>, vector<16x128xf32> -> vector<16x128xf32>
    %c0_74 = arith.constant 0 : index
    %c0_75 = arith.constant 0 : index
    %107 = vector.load %arg13[%c0_74, %c0_75] : memref<1x128xf32, #tpu.memory_space<vmem>>, vector<1x128xf32>
    %108 = vector.broadcast %107 : vector<1x128xf32> to vector<16x128xf32>
    %109 = arith.addf %106, %108 : vector<16x128xf32>
    %c0_76 = arith.constant 0 : index
    %c0_77 = arith.constant 0 : index
    %110 = vector.load %arg14[%c0_76, %c0_77] : memref<16x128xf32, #tpu.memory_space<vmem>>, vector<16x128xf32>
    tpu.vector_store %arg14[%c0_76, %c0_77], %109 {strides = array<i32>} : memref<16x128xf32, #tpu.memory_space<vmem>>, vector<16x128xf32>,
    return
  }
  func.func @transform_0(%arg0: i32) -> (i32, i32, i32) {
    %c0_i32 = arith.constant 0 : i32
    %c0_i32_0 = arith.constant 0 : i32
    %c0_i32_1 = arith.constant 0 : i32
    return %c0_i32, %arg0, %c0_i32_0 : i32, i32, i32
  }
  func.func @transform_1(%arg0: i32) -> (i32, i32) {
    %c0_i32 = arith.constant 0 : i32
    %c0_i32_0 = arith.constant 0 : i32
    return %arg0, %c0_i32 : i32, i32
  }
  func.func @transform_2(%arg0: i32) -> (i32, i32) {
    %c0_i32 = arith.constant 0 : i32
    %c0_i32_0 = arith.constant 0 : i32
    %c0_i32_1 = arith.constant 0 : i32
    return %c0_i32, %c0_i32_0 : i32, i32
  }
  func.func @transform_3(%arg0: i32) -> (i32, i32) {
    %c0_i32 = arith.constant 0 : i32
    %c0_i32_0 = arith.constant 0 : i32
    %c0_i32_1 = arith.constant 0 : i32
    return %c0_i32, %c0_i32_0 : i32, i32
  }
  func.func @transform_4(%arg0: i32) -> (i32, i32) {
    %c0_i32 = arith.constant 0 : i32
    %c0_i32_0 = arith.constant 0 : i32
    %c0_i32_1 = arith.constant 0 : i32
    return %c0_i32, %c0_i32_0 : i32, i32
  }
  func.func @transform_5(%arg0: i32) -> (i32, i32) {
    %c0_i32 = arith.constant 0 : i32
    %c0_i32_0 = arith.constant 0 : i32
    %c0_i32_1 = arith.constant 0 : i32
    return %c0_i32, %c0_i32_0 : i32, i32
  }
  func.func @transform_6(%arg0: i32) -> (i32, i32) {
    %c0_i32 = arith.constant 0 : i32
    %c0_i32_0 = arith.constant 0 : i32
    %c0_i32_1 = arith.constant 0 : i32
    return %c0_i32, %c0_i32_0 : i32, i32
  }
  func.func @transform_7(%arg0: i32) -> (i32, i32) {
    %c0_i32 = arith.constant 0 : i32
    %c0_i32_0 = arith.constant 0 : i32
    %c0_i32_1 = arith.constant 0 : i32
    return %c0_i32, %c0_i32_0 : i32, i32
  }
  func.func @transform_8(%arg0: i32) -> (i32, i32, i32) {
    %c0_i32 = arith.constant 0 : i32
    %c0_i32_0 = arith.constant 0 : i32
    %c0_i32_1 = arith.constant 0 : i32
    %c0_i32_2 = arith.constant 0 : i32
    return %c0_i32, %c0_i32_0, %c0_i32_1 : i32, i32, i32
  }
  func.func @transform_9(%arg0: i32) -> (i32, i32) {
    %c0_i32 = arith.constant 0 : i32
    %c0_i32_0 = arith.constant 0 : i32
    %c0_i32_1 = arith.constant 0 : i32
    return %c0_i32, %c0_i32_0 : i32, i32
  }
  func.func @transform_10(%arg0: i32) -> (i32, i32) {
    %c0_i32 = arith.constant 0 : i32
    %c0_i32_0 = arith.constant 0 : i32
    %c0_i32_1 = arith.constant 0 : i32
    return %c0_i32, %c0_i32_0 : i32, i32
  }
  func.func @transform_11(%arg0: i32) -> (i32, i32) {
    %c0_i32 = arith.constant 0 : i32
    %c0_i32_0 = arith.constant 0 : i32
    %c0_i32_1 = arith.constant 0 : i32
    return %c0_i32, %c0_i32_0 : i32, i32
  }
  func.func @transform_12(%arg0: i32) -> (i32, i32) {
    %c0_i32 = arith.constant 0 : i32
    %c0_i32_0 = arith.constant 0 : i32
    %c0_i32_1 = arith.constant 0 : i32
    return %c0_i32, %c0_i32_0 : i32, i32
  }
  func.func @transform_13(%arg0: i32) -> (i32, i32) {
    %c0_i32 = arith.constant 0 : i32
    %c0_i32_0 = arith.constant 0 : i32
    return %arg0, %c0_i32 : i32, i32
  }
}

</mosaic_0001>

<bundles_post_ra>
// kernel: cnn_w_beam_forward.1
= control target key start
LH: loop header
LB: loop body
LE: loop exit
PB: predicated region body
PF: predicated region fallthrough
CT: control target
= control target key end

     0   :  { %s5226_s0 = inlined_call_operand.vmem [shape: f32[16,32,16], index: 0, kind: input, shape index: {}]   ;;  %s5227_s1 = inlined_call_operand.vmem [shape: f32[32,3], index: 1, kind: input, shape index: {}]   ;;  %s5228_s2 = inlined_call_operand.hbm [shape: bf16[48,256], index: 2, kind: input, shape index: {}]   ;;  %s5229_s3 = inlined_call_operand.vmem [shape: f32[1,128], index: 3, kind: input, shape index: {}]   ;;  %s5230_s4 = inlined_call_operand.vmem [shape: bf16[384,256], index: 4, kind: input, shape index: {}]   ;;  %s5231_s5 = inlined_call_operand.vmem [shape: f32[1,128], index: 5, kind: input, shape index: {}]   ;;  %s5232_s6 = inlined_call_operand.vmem [shape: bf16[384,256], index: 6, kind: input, shape index: {}]   ;;  %s5233_s7 = inlined_call_operand.vmem [shape: f32[1,128], index: 7, kind: input, shape index: {}]   ;;  %s5234_s8 = inlined_call_operand.hbm [shape: bf16[2,128,128], index: 8, kind: input, shape index: {}]   ;;  %s5235_s9 = inlined_call_operand.vmem [shape: bf16[3,128], index: 9, kind: input, shape index: {}]   ;;  %s5236_s10 = inlined_call_operand.vmem [shape: f32[1,128], index: 10, kind: input, shape index: {}]   ;;  %s5237_s11 = inlined_call_operand.hbm [shape: bf16[128,128], index: 11, kind: input, shape index: {}]   ;;  %s5238_s12 = inlined_call_operand.vmem [shape: f32[1,128], index: 12, kind: input, shape index: {}]   ;;  %s5239_s13 = inlined_call_operand.vmem [shape: f32[32,128], index: 13, kind: output, shape index: {}]  }
   0x1   :  { %5243 = sst [smem:[#allocation15_spill]] %s5239_s13 }
   0x2   :  { %18 = vsyncpa [#allocation7], 0 }
   0x3   :  { %19 = vsyncpa [#allocation9], 0  ;;  %s4318_s25 = smov 0   ;;  %s4320_s26 = smov 0  }
   0x4   :  { %s4322_s27 = smov 0  }
   0x5 LB: > { %s5240_s28 = sadd.s32 4294967295, %s4233_s27   ;;  %s4335_s29 = sadd.s32 1, %s4233_s27   ;;  %s4233_s27 = sphi %s4322_s27, %s5252_s27   ;;  %s4229_s26 = sphi %s4320_s26, %s5255_s26   ;;  %s4225_s25 = sphi %s4318_s25, %s5254_s25  }
   0x6   : > { %5244 = sst [smem:[#allocation13_spill]] %s4335_s29  ;;  %s29_s30 = ssub.s32 %s4233_s27, %s4335_s29 }
   0x7   : > { %s32_s14 = sadd.s32 1, %s4229_s26  ;;  %p30_p0 = scmp.eq.s32.totalorder %s29_s30, 0 }
   0x8   : > { %p39_p1 = scmp.ne.s32.totalorder %s4229_s26, %s4225_s25  ;;  %p40_p2 = scmp.eq.s32.totalorder %s4233_s27, 0 }
   0x9   : > { %p3350_p3 = scmp.ge.s32.totalorder %s4233_s27, 1  ;;  %p339_p5 = scmp.lt.s32.totalorder %s4233_s27, 3 }
   0xa   : > { %s4345_s15 = scalar_select %p30_p0, %s4229_s26, %s32_s14  }
   0xb   : > { %p4347_p4 = por %p40_p2, %p39_p1  ;;  %p4354_p6 = scmp.eq.s32.totalorder %s5240_s28, 0 }
   0xc   : > { %5245 = sst [smem:[#allocation14_spill]] %s4345_s15  ;;  %p4358_p7 = pnand %p3350_p3, %p339_p5 }
   0xd   : > { %s4235_s19 = smov [#allocation8]   ;;  %s4236_s22 = smov [#allocation6]  }
   0xe   : > { %s379_s20 = sshll.u32 %s4235_s19, 4  ;;  %p3853_p8 = pneg %p4358_p7  ;;  %s380_s20 = int_to_ptr.vmem [resolvable:$true] %s379_s20 }
   0xf   : > { %s351_s23 = sshll.u32 %s4236_s22, 4  ;;  %s4136_s24 = scalar_lea.vmem %s380_s20, 2048  ;;  %s352_s23 = int_to_ptr.vmem [resolvable:$true] %s351_s23 }
  0x10   : > { %p4366_p9 = pnand %p4354_p6, %p3853_p8  ;;  %p4137_p11 = scmp.ne.s32.totalorder %s380_s20, %s4136_s24 }
  0x11   : > { %p4144_p0 = scmp.lt.s32.totalorder %s380_s20, %s380_s20  ;;  %p4145_p1 = scmp.lt.s32.totalorder %s4136_s24, %s4136_s24 }
  0x12   : > { %p4127_p10 = pneg %p4366_p9 }
  0x13   : > { %p4146_p2 = por %p4145_p1, %p4144_p0 }
  0x14   : > { %p4139_p12 = pnand %p4137_p11, %p4127_p10 }
  0x16   : > { %p4140_p13 = pneg %p4139_p12 }
  0x18   : > { %p4147_p3 = pnand %p4146_p2, %p4140_p13 }
  0x1a   : > { %4150 = shalt.err (!%p4147_p3)
}
  0x1b   : > { %s4237_s30 = smov 64   ;;  %s4238_s14 = smov 4  }
  0x1c   : > { %3859 = dma.hbm_to_vmem [thread:$0]  (!%p4366_p9), %s5234_s8, 2048, %s380_s20, [#allocation9], %s4237_s30, %s4237_s30, %s4238_s14  }
  0x1d   : > { %s4162_s28 = scalar_lea.vmem %s352_s23, 768  ;;  %p4170_p12 = scmp.lt.s32.totalorder %s352_s23, %s352_s23 }
  0x1e   : > { %p4163_p5 = scmp.ne.s32.totalorder %s352_s23, %s4162_s28  ;;  %p4171_p13 = scmp.lt.s32.totalorder %s4162_s28, %s4162_s28 }
  0x20   : > { %p4165_p8 = pnand %p4163_p5, %p4127_p10  ;;  %p4172_p0 = por %p4171_p13, %p4170_p12 }
  0x22   : > { %p4166_p11 = pneg %p4165_p8 }
  0x24   : > { %p4173_p1 = pnand %p4172_p0, %p4166_p11 }
  0x26   : > { %4176 = shalt.err (!%p4173_p1)
}
  0x27   : > { %s4239_s24 = smov 128   ;;  %s4240_s15 = smov 8  }
  0x28   : > { %3856 = dma.hbm_to_vmem [thread:$0]  (!%p4366_p9), %s5228_s2, 768, %s352_s23, [#allocation7], %s4239_s24, %s4239_s24, %s4240_s15  }
  0x29   : > { %s4241_s20 = smov [#allocation10]  }
  0x2a   : > { %s398_s19 = sshll.u32 %s4241_s20, 4  ;;  %s399_s19 = int_to_ptr.vmem [resolvable:$true] %s398_s19 }
  0x2b   : > { %s4188_s22 = scalar_lea.vmem %s399_s19, 1024  ;;  %p4196_p8 = scmp.lt.s32.totalorder %s399_s19, %s399_s19 }
  0x2c   : > { %p4189_p2 = scmp.ne.s32.totalorder %s399_s19, %s4188_s22  ;;  %p4197_p11 = scmp.lt.s32.totalorder %s4188_s22, %s4188_s22 }
  0x2e   : > { %p4191_p3 = pnand %p4189_p2, %p4127_p10  ;;  %p4198_p12 = por %p4197_p11, %p4196_p8 }
  0x30   : > { %p4192_p5 = pneg %p4191_p3 }
  0x32   : > { %p4199_p13 = pnand %p4198_p12, %p4192_p5 }
  0x34   : > { %4202 = shalt.err (!%p4199_p13)
}
  0x35   : > { %3862 = dma.hbm_to_vmem [thread:$0]  (!%p4366_p9), %s5237_s11, 1024, %s399_s19, [#allocation9], %s4237_s30, %s4237_s30, %s4238_s14  }
  0x36   : > { %p3354_p0 = scmp.ge.s32.totalorder %s4233_s27, 2 }
  0x38   : > { %411 = sbr.rel (%p3354_p0) target bundleno = 81 (0x51), region = 60 }
  0x3d   : > { %414 = sbr.rel (!%p4347_p4) target bundleno = 81 (0x51), region = 64  ;;  %s416_s29 = sand.u32 (%p4347_p4), 1, %s4229_s26  }
  0x3e   : > { %s3617_s15 = sshll.u32 (%p4347_p4), %s4233_s27, 4  ;;  %s3355_s23 = sshll.u32 (%p4347_p4), %s416_s29, 8 }
  0x3f   : > { %s4410_s20 = scalar_lea.vmem (%p4347_p4), %s5226_s0, %s3617_s15  ;;  %s4415_s16 = scalar_lea.vmem (%p4347_p4), [#allocation5], %s3355_s23 }
  0x40   : > { %v512_v0 = vld [vmem:[%s4410_s20] sm:$0xff] (%p4347_p4)  ;;  %v514_v1 = vld [vmem:[%s4410_s20 + $0x8] sm:$0xff] (%p4347_p4) }
  0x41   : > { %v516_v2 = vld [vmem:[%s4410_s20 + $0x20] sm:$0xff] (%p4347_p4)  ;;  %513 = vst [vmem:[%s4415_s16] sm:$0xff] (%p4347_p4), %v512_v0  ;;  %515 = vst [vmem:[%s4415_s16 + $0x8] sm:$0xff] (%p4347_p4), %v514_v1  ;;  %v518_v3 = vld [vmem:[%s4410_s20 + $0x28] sm:$0xff] (%p4347_p4) }
  0x42   : > { %517 = vst [vmem:[%s4415_s16 + $0x10] sm:$0xff] %v516_v2  ;;  %v520_v4 = vld [vmem:[%s4410_s20 + $0x40] sm:$0xff]  ;;  %v522_v5 = vld [vmem:[%s4410_s20 + $0x48] sm:$0xff]  ;;  %519 = vst [vmem:[%s4415_s16 + $0x18] sm:$0xff] %v518_v3 }
  0x43   : > { %521 = vst [vmem:[%s4415_s16 + $0x20] sm:$0xff] %v520_v4  ;;  %523 = vst [vmem:[%s4415_s16 + $0x28] sm:$0xff] %v522_v5  ;;  %v524_v6 = vld [vmem:[%s4410_s20 + $0x60] sm:$0xff]  ;;  %v526_v7 = vld [vmem:[%s4410_s20 + $0x68] sm:$0xff] }
  0x44   : > { %v528_v8 = vld [vmem:[%s4410_s20 + $0x80] sm:$0xff]  ;;  %525 = vst [vmem:[%s4415_s16 + $0x30] sm:$0xff] %v524_v6  ;;  %527 = vst [vmem:[%s4415_s16 + $0x38] sm:$0xff] %v526_v7  ;;  %v530_v9 = vld [vmem:[%s4410_s20 + $0x88] sm:$0xff] }
  0x45   : > { %529 = vst [vmem:[%s4415_s16 + $0x40] sm:$0xff] %v528_v8  ;;  %v532_v10 = vld [vmem:[%s4410_s20 + $0xa0] sm:$0xff]  ;;  %v534_v11 = vld [vmem:[%s4410_s20 + $0xa8] sm:$0xff]  ;;  %531 = vst [vmem:[%s4415_s16 + $0x48] sm:$0xff] %v530_v9 }
  0x46   : > { %533 = vst [vmem:[%s4415_s16 + $0x50] sm:$0xff] %v532_v10  ;;  %535 = vst [vmem:[%s4415_s16 + $0x58] sm:$0xff] %v534_v11  ;;  %v536_v12 = vld [vmem:[%s4410_s20 + $0xc0] sm:$0xff]  ;;  %v538_v13 = vld [vmem:[%s4410_s20 + $0xc8] sm:$0xff] }
  0x47   : > { %v540_v14 = vld [vmem:[%s4410_s20 + $0xe0] sm:$0xff]  ;;  %537 = vst [vmem:[%s4415_s16 + $0x60] sm:$0xff] %v536_v12  ;;  %539 = vst [vmem:[%s4415_s16 + $0x68] sm:$0xff] %v538_v13  ;;  %v542_v15 = vld [vmem:[%s4410_s20 + $0xe8] sm:$0xff] }
  0x48   : > { %541 = vst [vmem:[%s4415_s16 + $0x70] sm:$0xff] %v540_v14  ;;  %v544_v16 = vld [vmem:[%s4410_s20 + $0x100] sm:$0xff]  ;;  %v546_v17 = vld [vmem:[%s4410_s20 + $0x108] sm:$0xff]  ;;  %543 = vst [vmem:[%s4415_s16 + $0x78] sm:$0xff] %v542_v15 }
  0x49   : > { %545 = vst [vmem:[%s4415_s16 + $0x80] sm:$0xff] %v544_v16  ;;  %547 = vst [vmem:[%s4415_s16 + $0x88] sm:$0xff] %v546_v17  ;;  %v548_v18 = vld [vmem:[%s4410_s20 + $0x120] sm:$0xff]  ;;  %v550_v19 = vld [vmem:[%s4410_s20 + $0x128] sm:$0xff] }
  0x4a   : > { %v552_v20 = vld [vmem:[%s4410_s20 + $0x140] sm:$0xff]  ;;  %549 = vst [vmem:[%s4415_s16 + $0x90] sm:$0xff] %v548_v18  ;;  %551 = vst [vmem:[%s4415_s16 + $0x98] sm:$0xff] %v550_v19  ;;  %v554_v21 = vld [vmem:[%s4410_s20 + $0x148] sm:$0xff] }
  0x4b   : > { %553 = vst [vmem:[%s4415_s16 + $0xa0] sm:$0xff] %v552_v20  ;;  %v556_v22 = vld [vmem:[%s4410_s20 + $0x160] sm:$0xff]  ;;  %v558_v23 = vld [vmem:[%s4410_s20 + $0x168] sm:$0xff]  ;;  %555 = vst [vmem:[%s4415_s16 + $0xa8] sm:$0xff] %v554_v21 }
  0x4c   : > { %557 = vst [vmem:[%s4415_s16 + $0xb0] sm:$0xff] %v556_v22  ;;  %559 = vst [vmem:[%s4415_s16 + $0xb8] sm:$0xff] %v558_v23  ;;  %v560_v24 = vld [vmem:[%s4410_s20 + $0x180] sm:$0xff]  ;;  %v562_v25 = vld [vmem:[%s4410_s20 + $0x188] sm:$0xff] }
  0x4d   : > { %v564_v26 = vld [vmem:[%s4410_s20 + $0x1a0] sm:$0xff]  ;;  %561 = vst [vmem:[%s4415_s16 + $0xc0] sm:$0xff] %v560_v24  ;;  %563 = vst [vmem:[%s4415_s16 + $0xc8] sm:$0xff] %v562_v25  ;;  %v566_v27 = vld [vmem:[%s4410_s20 + $0x1a8] sm:$0xff] }
  0x4e   : > { %565 = vst [vmem:[%s4415_s16 + $0xd0] sm:$0xff] %v564_v26  ;;  %v568_v28 = vld [vmem:[%s4410_s20 + $0x1c0] sm:$0xff]  ;;  %v570_v29 = vld [vmem:[%s4410_s20 + $0x1c8] sm:$0xff]  ;;  %567 = vst [vmem:[%s4415_s16 + $0xd8] sm:$0xff] %v566_v27 }
  0x4f   : > { %569 = vst [vmem:[%s4415_s16 + $0xe0] sm:$0xff] %v568_v28  ;;  %571 = vst [vmem:[%s4415_s16 + $0xe8] sm:$0xff] %v570_v29  ;;  %v572_v30 = vld [vmem:[%s4410_s20 + $0x1e0] sm:$0xff]  ;;  %v574_v31 = vld [vmem:[%s4410_s20 + $0x1e8] sm:$0xff] }
  0x50   : > { %573 = vst [vmem:[%s4415_s16 + $0xf0] sm:$0xff] %v572_v30  ;;  %575 = vst [vmem:[%s4415_s16 + $0xf8] sm:$0xff] %v574_v31 }
  0x51 PF: > { %593 = sbr.rel (%p4358_p7) target bundleno = 1494 (0x5d6), region = 106  ;;  %s596_s30 = sand.u32 (!%p4358_p7), 1, %s4225_s25  }
  0x52   : > { %s3359_s14 = sshll.u32 (!%p4358_p7), %s596_s30, 8 }
  0x53   : > { %s4481_s19 = scalar_lea.vmem (!%p4358_p7), [#allocation5], %s3359_s14 }
  0x56   : > { %4216 = dma.done.wait (%p4354_p6), [#allocation7], 768  }
  0x57   : > { %4218 = vsyncadd (%p4354_p6), [#allocation7], 4294966528 }
  0x58   : > { %4220 = dma.done.wait (%p4354_p6), [#allocation9], 3072  }
  0x59   : > { %4222 = vsyncadd (%p4354_p6), [#allocation9], 4294964224  ;;  %vm670_vm0 = vcmask 125952   ;;  %v4242_v32 = vmov 0   ;;  %v673_v33 = vld [vmem:[%s4481_s19] sm:$0xff]  ;;  %v674_v34 = vld [vmem:[%s4481_s19 + $0x8] sm:$0xff] }
  0x5a   : > { %671 = vst.msk [vmem:[#allocation2] sm:$0xf] %vm670_vm0, %v4242_v32  ;;  %672 = vst.msk [vmem:[#allocation2 + $0x4] sm:$0xf] %vm670_vm0, %v4242_v32  ;;  %1240 = vmatprep.mubr.bf16.mxu0 %v4242_v32  ;;  %v675_v35 = vld [vmem:[%s4481_s19 + $0x10] sm:$0xff]  ;;  %v3618_v36 = vpack.c.bf16 %v673_v33, %v673_v33  ;;  %v3619_v37 = vpack.c.bf16 %v674_v34, %v674_v34  ;;  %v676_v38 = vld [vmem:[%s4481_s19 + $0x18] sm:$0xff] }
  0x5b   : > { %865 = vst.msk [vmem:[#allocation2 + $0x88] sm:$0xf] %vm670_vm0, %v4242_v32  ;;  %866 = vst.msk [vmem:[#allocation2 + $0x8c] sm:$0xf] %vm670_vm0, %v4242_v32  ;;  %v3620_v39 = vpack.c.bf16 %v675_v35, %v675_v35  ;;  %v677_v40 = vld [vmem:[%s4481_s19 + $0x20] sm:$0xff]  ;;  %v678_v41 = vld [vmem:[%s4481_s19 + $0x28] sm:$0xff]  ;;  %v3621_v42 = vpack.c.bf16 %v676_v38, %v676_v38 }
  0x5c   : > { %1488 = vst [vmem:[#allocation3] sm:$0xf] %v4242_v32  ;;  %1489 = vst [vmem:[#allocation3 + $0x4] sm:$0xf] %v4242_v32  ;;  %v3622_v43 = vpack.c.bf16 %v677_v40, %v677_v40  ;;  %v3623_v44 = vpack.c.bf16 %v678_v41, %v678_v41  ;;  %v679_v45 = vld [vmem:[%s4481_s19 + $0x30] sm:$0xff]  ;;  %v680_v46 = vld [vmem:[%s4481_s19 + $0x38] sm:$0xff] }
  0x5d   : > { %1570 = vst [vmem:[#allocation3 + $0x48] sm:$0xf] %v4242_v32  ;;  %1571 = vst [vmem:[#allocation3 + $0x4c] sm:$0xf] %v4242_v32  ;;  %v681_v47 = vld [vmem:[%s4481_s19 + $0x40] sm:$0xff]  ;;  %v3624_v48 = vpack.c.bf16 %v679_v45, %v679_v45  ;;  %v3625_v49 = vpack.c.bf16 %v680_v46, %v680_v46  ;;  %v682_v50 = vld [vmem:[%s4481_s19 + $0x48] sm:$0xff] }
  0x5e   : > { %2269 = vst [vmem:[#allocation4] sm:$0xf] %v4242_v32  ;;  %2270 = vst [vmem:[#allocation4 + $0x4] sm:$0xf] %v4242_v32  ;;  %v3626_v51 = vpack.c.bf16 %v681_v47, %v681_v47  ;;  %v683_v52 = vld [vmem:[%s4481_s19 + $0x50] sm:$0xff]  ;;  %v684_v53 = vld [vmem:[%s4481_s19 + $0x58] sm:$0xff]  ;;  %v3627_v54 = vpack.c.bf16 %v682_v50, %v682_v50 }
  0x5f   : > { %2311 = vst [vmem:[#allocation4 + $0x28] sm:$0xf] %v4242_v32  ;;  %2312 = vst [vmem:[#allocation4 + $0x2c] sm:$0xf] %v4242_v32  ;;  %v3628_v55 = vpack.c.bf16 %v683_v52, %v683_v52  ;;  %v3629_v56 = vpack.c.bf16 %v684_v53, %v684_v53  ;;  %v685_v57 = vld [vmem:[%s4481_s19 + $0x60] sm:$0xff]  ;;  %v686_v58 = vld [vmem:[%s4481_s19 + $0x68] sm:$0xff] }
  0x60   : > { %833 = vst.msk [vmem:[#allocation2 + $0x8] sm:$0xf] %vm670_vm0, %v3618_v36  ;;  %834 = vst.msk [vmem:[#allocation2 + $0xc] sm:$0xf] %vm670_vm0, %v3619_v37  ;;  %v687_v59 = vld [vmem:[%s4481_s19 + $0x70] sm:$0xff]  ;;  %v3630_v60 = vpack.c.bf16 %v685_v57, %v685_v57  ;;  %v3631_v61 = vpack.c.bf16 %v686_v58, %v686_v58  ;;  %v688_v62 = vld [vmem:[%s4481_s19 + $0x78] sm:$0xff] }
  0x61   : > { %835 = vst.msk [vmem:[#allocation2 + $0x10] sm:$0xf] %vm670_vm0, %v3620_v39  ;;  %836 = vst.msk [vmem:[#allocation2 + $0x14] sm:$0xf] %vm670_vm0, %v3621_v42  ;;  %v3632_v63 = vpack.c.bf16 %v687_v59, %v687_v59  ;;  %v689_v0 = vld [vmem:[%s4481_s19 + $0x80] sm:$0xff]  ;;  %v690_v1 = vld [vmem:[%s4481_s19 + $0x88] sm:$0xff]  ;;  %v3633_v2 = vpack.c.bf16 %v688_v62, %v688_v62 }
  0x62   : > { %837 = vst.msk [vmem:[#allocation2 + $0x18] sm:$0xf] %vm670_vm0, %v3622_v43  ;;  %838 = vst.msk [vmem:[#allocation2 + $0x1c] sm:$0xf] %vm670_vm0, %v3623_v44  ;;  %v3634_v3 = vpack.c.bf16 %v689_v0, %v689_v0  ;;  %v3635_v4 = vpack.c.bf16 %v690_v1, %v690_v1  ;;  %v691_v5 = vld [vmem:[%s4481_s19 + $0x90] sm:$0xff]  ;;  %v692_v6 = vld [vmem:[%s4481_s19 + $0x98] sm:$0xff] }
  0x63   : > { %839 = vst.msk [vmem:[#allocation2 + $0x20] sm:$0xf] %vm670_vm0, %v3624_v48  ;;  %840 = vst.msk [vmem:[#allocation2 + $0x24] sm:$0xf] %vm670_vm0, %v3625_v49  ;;  %v693_v7 = vld [vmem:[%s4481_s19 + $0xa0] sm:$0xff]  ;;  %v3636_v8 = vpack.c.bf16 %v691_v5, %v691_v5  ;;  %v3637_v9 = vpack.c.bf16 %v692_v6, %v692_v6  ;;  %v694_v10 = vld [vmem:[%s4481_s19 + $0xa8] sm:$0xff] }
  0x64   : > { %841 = vst.msk [vmem:[#allocation2 + $0x28] sm:$0xf] %vm670_vm0, %v3626_v51  ;;  %842 = vst.msk [vmem:[#allocation2 + $0x2c] sm:$0xf] %vm670_vm0, %v3627_v54  ;;  %v3638_v11 = vpack.c.bf16 %v693_v7, %v693_v7  ;;  %v695_v12 = vld [vmem:[%s4481_s19 + $0xb0] sm:$0xff]  ;;  %v696_v13 = vld [vmem:[%s4481_s19 + $0xb8] sm:$0xff]  ;;  %v3639_v14 = vpack.c.bf16 %v694_v10, %v694_v10 }
  0x65   : > { %843 = vst.msk [vmem:[#allocation2 + $0x30] sm:$0xf] %vm670_vm0, %v3628_v55  ;;  %844 = vst.msk [vmem:[#allocation2 + $0x34] sm:$0xf] %vm670_vm0, %v3629_v56  ;;  %v3640_v15 = vpack.c.bf16 %v695_v12, %v695_v12  ;;  %v3641_v16 = vpack.c.bf16 %v696_v13, %v696_v13  ;;  %v697_v17 = vld [vmem:[%s4481_s19 + $0xc0] sm:$0xff]  ;;  %v698_v18 = vld [vmem:[%s4481_s19 + $0xc8] sm:$0xff] }
  0x66   : > { %845 = vst.msk [vmem:[#allocation2 + $0x38] sm:$0xf] %vm670_vm0, %v3630_v60  ;;  %846 = vst.msk [vmem:[#allocation2 + $0x3c] sm:$0xf] %vm670_vm0, %v3631_v61  ;;  %v699_v19 = vld [vmem:[%s4481_s19 + $0xd0] sm:$0xff]  ;;  %v3642_v20 = vpack.c.bf16 %v697_v17, %v697_v17  ;;  %v3643_v21 = vpack.c.bf16 %v698_v18, %v698_v18  ;;  %v700_v22 = vld [vmem:[%s4481_s19 + $0xd8] sm:$0xff] }
  0x67   : > { %847 = vst.msk [vmem:[#allocation2 + $0x40] sm:$0xf] %vm670_vm0, %v3632_v63  ;;  %848 = vst.msk [vmem:[#allocation2 + $0x44] sm:$0xf] %vm670_vm0, %v3633_v2  ;;  %v3644_v23 = vpack.c.bf16 %v699_v19, %v699_v19  ;;  %v4557_v24 = vld [vmem:[#allocation2 + $0x8] sm:$0xff]   ;;  %v3645_v25 = vpack.c.bf16 %v700_v22, %v700_v22  ;;  %s4243_s25 = smov 16  }
  0x68   : > { %849 = vst.msk [vmem:[#allocation2 + $0x48] sm:$0xf] %vm670_vm0, %v3634_v3  ;;  %850 = vst.msk [vmem:[#allocation2 + $0x4c] sm:$0xf] %vm670_vm0, %v3635_v4  ;;  %v4562_v26 = vld [vmem:[#allocation2 + $0x10] sm:$0xff]   ;;  %988 = vrot.lane.b32.xlu0 %v4557_v24, %s4243_s25  ;;  %s4244_s17 = smov 32  }
  0x69   : > { %851 = vst.msk [vmem:[#allocation2 + $0x50] sm:$0xf] %vm670_vm0, %v3636_v8  ;;  %852 = vst.msk [vmem:[#allocation2 + $0x54] sm:$0xf] %vm670_vm0, %v3637_v9  ;;  %990 = vrot.lane.b32.xlu1 %v4562_v26, %s4243_s25  ;;  %v4572_v27 = vld [vmem:[#allocation2 + $0x18] sm:$0xff]   ;;  %v1143_v29 = vld [vmem:[#allocation6 + $0x20] sm:$0xff] }
  0x6a   : > { %853 = vst.msk [vmem:[#allocation2 + $0x58] sm:$0xf] %vm670_vm0, %v3638_v11  ;;  %854 = vst.msk [vmem:[#allocation2 + $0x5c] sm:$0xf] %vm670_vm0, %v3639_v14  ;;  %v4578_v28 = vld [vmem:[#allocation2 + $0x20] sm:$0xff]   ;;  %v1144_v30 = vld [vmem:[#allocation6 + $0x28] sm:$0xff] }
  0x6b   : > { %855 = vst.msk [vmem:[#allocation2 + $0x60] sm:$0xf] %vm670_vm0, %v3640_v15  ;;  %856 = vst.msk [vmem:[#allocation2 + $0x64] sm:$0xf] %vm670_vm0, %v3641_v16  ;;  %v4584_v31 = vld [vmem:[#allocation2 + $0x28] sm:$0xff]   ;;  %v3421_v34 = vcombine.low %v1143_v29, %v1144_v30  ;;  %v701_v36 = vld [vmem:[%s4481_s19 + $0xe0] sm:$0xff] }
  0x6c   : > { %857 = vst.msk [vmem:[#allocation2 + $0x68] sm:$0xf] %vm670_vm0, %v3642_v20  ;;  %858 = vst.msk [vmem:[#allocation2 + $0x6c] sm:$0xf] %vm670_vm0, %v3643_v21  ;;  %1025 = vrot.lane.b32.xlu0 %v4562_v26, %s4244_s17  ;;  %v4586_v33 = vld [vmem:[#allocation2 + $0x30] sm:$0xff]   ;;  %v702_v37 = vld [vmem:[%s4481_s19 + $0xe8] sm:$0xff]  ;;  %v3646_v38 = vpack.c.bf16 %v701_v36, %v701_v36 }
  0x6d   : > { %859 = vst.msk [vmem:[#allocation2 + $0x70] sm:$0xf] %vm670_vm0, %v3644_v23  ;;  %860 = vst.msk [vmem:[#allocation2 + $0x74] sm:$0xf] %vm670_vm0, %v3645_v25  ;;  %1027 = vrot.lane.b32.xlu1 %v4572_v27, %s4244_s17  ;;  %v3920_v35 = vld [vmem:[#allocation6 + $0x24] ss:$8 sps:$4 sm:$0xff]   ;;  %v3647_v39 = vpack.c.bf16 %v702_v37, %v702_v37 }
  0x6e   : > { %v3923_v40 = vld [vmem:[#allocation6 + $0x14] ss:$8 sps:$4 sm:$0xff]   ;;  %1218 = vmatprep.subr.bf16.mxu0 %v3920_v35  ;;  %861 = vst.msk [vmem:[#allocation2 + $0x78] sm:$0xf] %vm670_vm0, %v3646_v38  ;;  %v3925_v41 = vld [vmem:[#allocation6 + $0x10] ss:$8 sps:$4 sm:$0xff]  }
  0x6f   : > { %862 = vst.msk [vmem:[#allocation2 + $0x7c] sm:$0xf] %vm670_vm0, %v3647_v39  ;;  %1219 = vmatpush1.bf16.msra.mxu0 %v3421_v34  ;;  %v1139_v42 = vld [vmem:[#allocation6] sm:$0xff]  ;;  %v1140_v43 = vld [vmem:[#allocation6 + $0x8] sm:$0xff]  ;;  %v703_v45 = vld [vmem:[%s4481_s19 + $0xf0] sm:$0xff]  ;;  %vm1057_vm1 = vcmask 130048  }
  0x70   : > { %992 = vrot.lane.b32.xlu0 %v4572_v27, %s4243_s25  ;;  %1220 = vmatprep.subr.bf16.mxu0 %v3923_v40  ;;  %v3927_v44 = vld [vmem:[#allocation6 + $0x4] ss:$8 sps:$4 sm:$0xff]   ;;  %v704_v46 = vld [vmem:[%s4481_s19 + $0xf8] sm:$0xff]  ;;  %v3648_v48 = vpack.c.bf16 %v703_v45, %v703_v45  ;;  %v4604_v50 = vld [vmem:[#allocation2 + $0x40] sm:$0xff]   ;;  %v3417_v51 = vcombine.low %v1139_v42, %v1140_v43  ;;  %vm1106_vm2 = vcmask 261120   ;;  %vm1175_vm3 = vcmask 392192  }
  0x71   : > { %1029 = vrot.lane.b32.xlu1 %v4578_v28, %s4244_s17  ;;  %v4602_v47 = vld [vmem:[#allocation2 + $0x38] sm:$0xff]   ;;  %v3649_v49 = vpack.c.bf16 %v704_v46, %v704_v46  ;;  %v4612_v52 = vld [vmem:[#allocation2 + $0x48] sm:$0xff]   ;;  %v4618_v53 = vld [vmem:[#allocation2 + $0x50] sm:$0xff]   ;;  %vm4246_vm4 = vmmov 0   ;;  %s5250_s29 = sadd.s32 4294967295, %s4233_s27   ;;  %vm2960_vm5 = vcmask 1040384  }
  0x72   : > { %863 = vst.msk [vmem:[#allocation2 + $0x80] sm:$0xf] %vm670_vm0, %v3648_v48  ;;  %v4624_v54 = vld [vmem:[#allocation2 + $0x58] sm:$0xff]   ;;  %v4630_v55 = vld [vmem:[#allocation2 + $0x60] sm:$0xff]   ;;  %v3930_v60 = vld [vmem:[#allocation2 + $0x88] sm:$0xff]   ;;  %s3363_s15 = sshll.u32 %s5250_s29, 1 }
  0x73   : > { %1221 = vmatpush1.bf16.msra.mxu0 %v3925_v41  ;;  %864 = vst.msk [vmem:[#allocation2 + $0x84] sm:$0xf] %vm670_vm0, %v3649_v49  ;;  %v4636_v56 = vld [vmem:[#allocation2 + $0x68] sm:$0xff]   ;;  %v3931_v61 = vld [vmem:[%s5230_s4 + $0x74] ss:$8 sps:$4 sm:$0xff]   ;;  %v3926_v1 = vld [vmem:[#allocation2] sm:$0xff]  }
  0x74   : > { %994 = vrot.lane.b32.xlu0 %v4578_v28, %s4243_s25  ;;  %1222 = vmatprep.subr.bf16.mxu0 %v3927_v44  ;;  %v4642_v57 = vld [vmem:[#allocation2 + $0x70] sm:$0xff]   ;;  %v3934_v63 = vld [vmem:[%s5230_s4 + $0x64] ss:$8 sps:$4 sm:$0xff]   ;;  %v3936_v3 = vld [vmem:[%s5230_s4 + $0x60] ss:$8 sps:$4 sm:$0xff]   ;;  %p658_p4 = scmp.lt.s32.totalorder %s3363_s15, 3 }
  0x75   : > { %1031 = vrot.lane.b32.xlu1 %v4584_v31, %s4244_s17  ;;  %v3933_v62 = vld [vmem:[%s5230_s4 + $0x70] ss:$8 sps:$4 sm:$0xff]   ;;  %1996 = vmatprep.subr.bf16.mxu1 %v3931_v61  ;;  %v3937_v4 = vld [vmem:[%s5230_s4 + $0x54] ss:$8 sps:$4 sm:$0xff]   ;;  %v3940_v10 = vld [vmem:[%s5230_s4 + $0x44] ss:$8 sps:$4 sm:$0xff]  }
  0x76   : > { %v4648_v58 = vld [vmem:[#allocation2 + $0x78] sm:$0xff]   ;;  %1997 = vmatpush1.bf16.msra.mxu1 %v3933_v62  ;;  %v3942_v13 = vld [vmem:[%s5230_s4 + $0x40] ss:$8 sps:$4 sm:$0xff]   ;;  %s5257_s15 = smov (!%p658_p4, %s3363_s15), 3  ;;  %vm2961_vm6 = vcmask 1041408   ;;  %vm2956_vm7 = vcmask 23552  }
  0x77   : > { %1223 = vmatpush1.bf16.msra.mxu0 %v3417_v51  ;;  %1998 = vmatprep.subr.bf16.mxu1 %v3934_v63  ;;  %v3939_v9 = vld [vmem:[%s5230_s4 + $0x50] ss:$8 sps:$4 sm:$0xff]   ;;  %v3943_v15 = vld [vmem:[%s5230_s4 + $0x34] ss:$8 sps:$4 sm:$0xff]   ;;  %s3364_s20 = sshll.u32 %s5257_s15, 3  ;;  %s5251_s28 = sld [smem:[#allocation15_spill]] }
  0x78   : > { %996 = vrot.lane.b32.xlu0 %v4584_v31, %s4243_s25  ;;  %v3945_v19 = vld [vmem:[%s5230_s4 + $0x30] ss:$8 sps:$4 sm:$0xff]   ;;  %s661_s14 = scalar_lea.vmem %s5227_s1, %s3364_s20 }
  0x79   : > { %1033 = vrot.lane.b32.xlu1 %v4586_v33, %s4244_s17 }
  0x7a   : > { %v3929_v59 = vld [vmem:[#allocation2 + $0x80] sm:$0xff]   ;;  %1999 = vmatpush1.bf16.msra.mxu1 %v3936_v3 }
  0x7b   : > { %2000 = vmatprep.subr.bf16.mxu1 %v3937_v4 }
  0x7c   : > { %998 = vrot.lane.b32.xlu0 %v4586_v33, %s4243_s25 }
  0x7d   : > { %1035 = vrot.lane.b32.xlu1 %v4602_v47, %s4244_s17  ;;  %s667_s29 = scalar_lea.vmem %s5251_s28, %s3364_s20 }
  0x7e   : > { %2001 = vmatpush1.bf16.msra.mxu1 %v3939_v9 }
  0x7f   : > { %2002 = vmatprep.subr.bf16.mxu1 %v3940_v10 }
  0x80   : > { %1000 = vrot.lane.b32.xlu0 %v4602_v47, %s4243_s25 }
  0x81   : > { %1037 = vrot.lane.b32.xlu1 %v4604_v50, %s4244_s17 }
  0x82   : > { %2003 = vmatpush1.bf16.msra.mxu1 %v3942_v13  ;;  %v3952_v13 = vld [vmem:[%s5230_s4 + $0x4] ss:$8 sps:$4 sm:$0xff]  }
  0x83   : > { %2004 = vmatprep.subr.bf16.mxu1 %v3943_v15  ;;  %v3955_v15 = vld [vmem:[%s5230_s4 + $0xf4] ss:$8 sps:$4 sm:$0xff]  }
  0x84   : > { %1002 = vrot.lane.b32.xlu0 %v4604_v50, %s4243_s25 }
  0x85   : > { %1039 = vrot.lane.b32.xlu1 %v4612_v52, %s4244_s17 }
  0x86   : > { %2005 = vmatpush1.bf16.msra.mxu1 %v3945_v19  ;;  %v3961_v19 = vld [vmem:[%s5230_s4 + $0xd4] ss:$8 sps:$4 sm:$0xff]  }
  0x88   : > { %1004 = vrot.lane.b32.xlu0 %v4612_v52, %s4243_s25 }
  0x89   : > { %1041 = vrot.lane.b32.xlu1 %v4618_v53, %s4244_s17 }
  0x8c   : > { %1006 = vrot.lane.b32.xlu0 %v4618_v53, %s4243_s25 }
  0x8d   : > { %1043 = vrot.lane.b32.xlu1 %v4624_v54, %s4244_s17 }
  0x90   : > { %1008 = vrot.lane.b32.xlu0 %v4624_v54, %s4243_s25 }
  0x91   : > { %1045 = vrot.lane.b32.xlu1 %v4630_v55, %s4244_s17 }
  0x94   : > { %1010 = vrot.lane.b32.xlu0 %v4630_v55, %s4243_s25 }
  0x95   : > { %1047 = vrot.lane.b32.xlu1 %v4636_v56, %s4244_s17 }
  0x98   : > { %1012 = vrot.lane.b32.xlu0 %v4636_v56, %s4243_s25 }
  0x99   : > { %1049 = vrot.lane.b32.xlu1 %v4642_v57, %s4244_s17 }
  0x9c   : > { %1014 = vrot.lane.b32.xlu0 %v4642_v57, %s4243_s25 }
  0x9d   : > { %1051 = vrot.lane.b32.xlu1 %v4648_v58, %s4244_s17 }
  0xa0   : > { %1016 = vrot.lane.b32.xlu0 %v4648_v58, %s4243_s25 }
  0xa1   : > { %1053 = vrot.lane.b32.xlu1 %v3929_v59, %s4244_s17 }
  0xa4   : > { %1018 = vrot.lane.b32.xlu0 %v3929_v59, %s4243_s25 }
  0xa5   : > { %1055 = vrot.lane.b32.xlu1 %v3930_v60, %s4244_s17 }
  0xda   : > { %v989_v0 = vpop.permute.xlu0 %988 }
  0xdb   : > { %v991_v2 = vpop.permute.xlu1 %990  ;;  %v1060_v5 = vsel %vm1057_vm1, %v3926_v1, %v989_v0 }
  0xdc   : > { %v1063_v14 = vsel %vm1057_vm1, %v4557_v24, %v991_v2 }
  0xde   : > { %v1026_v6 = vpop.permute.xlu0 %1025 }
  0xdf   : > { %v1108_v7 = vsel %vm1106_vm2, %v1060_v5, %v1026_v6  ;;  %v1028_v8 = vpop.permute.xlu1 %1027 }
  0xe0   : > { %3423 = vmatmul.mubr.msk.bf16.vlgmr.msra.gmra.mxu0 %vm1175_vm3, %v1108_v7  ;;  %v1110_v17 = vsel %vm1106_vm2, %v1063_v14, %v1028_v8  ;;  %v3954_v14 = vld [vmem:[%s5230_s4] ss:$8 sps:$4 sm:$0xff]  }
  0xe1   : > { %1250 = vmatprep.mubr.bf16.mxu0 %v4242_v32 }
  0xe2   : > { %v993_v11 = vpop.permute.xlu0 %992 }
  0xe3   : > { %v1030_v12 = vpop.permute.xlu1 %1029  ;;  %v1066_v20 = vsel %vm1057_vm1, %v4562_v26, %v993_v11 }
  0xe4   : > { %v1112_v23 = vsel %vm1106_vm2, %v1066_v20, %v1030_v12  ;;  %v3951_v12 = vld [vmem:[%s5230_s4 + $0x10] ss:$8 sps:$4 sm:$0xff]  }
  0xe5   : > { %v3963_v20 = vld [vmem:[%s5230_s4 + $0xd0] ss:$8 sps:$4 sm:$0xff]  }
  0xe6   : > { %v995_v16 = vpop.permute.xlu0 %994 }
  0xe7   : > { %v1032_v18 = vpop.permute.xlu1 %1031  ;;  %v1069_v29 = vsel %vm1057_vm1, %v4572_v27, %v995_v16  ;;  %v3957_v16 = vld [vmem:[%s5230_s4 + $0xf0] ss:$8 sps:$4 sm:$0xff]  }
  0xe8   : > { %3424 = vmatmul.mubr.msk.bf16.gmra.mxu0 %vm1175_vm3, %v1110_v17  ;;  %v1114_v35 = vsel %vm1106_vm2, %v1069_v29, %v1032_v18  ;;  %v3958_v17 = vld [vmem:[%s5230_s4 + $0xe4] ss:$8 sps:$4 sm:$0xff]   ;;  %v3960_v18 = vld [vmem:[%s5230_s4 + $0xe0] ss:$8 sps:$4 sm:$0xff]  }
  0xe9   : > { %1260 = vmatprep.mubr.bf16.mxu0 %v4242_v32  ;;  %v3972_v29 = vld [vmem:[%s5230_s4 + $0xa0] ss:$8 sps:$4 sm:$0xff]  }
  0xea   : > { %v997_v21 = vpop.permute.xlu0 %996 }
  0xeb   : > { %v1034_v22 = vpop.permute.xlu1 %1033  ;;  %v1072_v37 = vsel %vm1057_vm1, %v4578_v28, %v997_v21  ;;  %v3964_v21 = vld [vmem:[%s5230_s4 + $0xc4] ss:$8 sps:$4 sm:$0xff]  }
  0xec   : > { %v1116_v41 = vsel %vm1106_vm2, %v1072_v37, %v1034_v22  ;;  %v3966_v22 = vld [vmem:[%s5230_s4 + $0xc0] ss:$8 sps:$4 sm:$0xff]  }
  0xee   : > { %v999_v24 = vpop.permute.xlu0 %998 }
  0xef   : > { %v1036_v25 = vpop.permute.xlu1 %1035  ;;  %v1075_v28 = vsel %vm1057_vm1, %v4584_v31, %v999_v24  ;;  %v3969_v24 = vld [vmem:[%s5230_s4 + $0xb0] ss:$8 sps:$4 sm:$0xff]  }
  0xf0   : > { %3425 = vmatmul.mubr.msk.bf16.gmra.mxu0 %vm1175_vm3, %v1112_v23  ;;  %v1118_v51 = vsel %vm1106_vm2, %v1075_v28, %v1036_v25  ;;  %v3967_v23 = vld [vmem:[%s5230_s4 + $0xb4] ss:$8 sps:$4 sm:$0xff]   ;;  %v3970_v25 = vld [vmem:[%s5230_s4 + $0xa4] ss:$8 sps:$4 sm:$0xff]   ;;  %v4852_v28 = vld [vmem:[%s5229_s3] ss:$0 sm:$0xff] }
  0xf1   : > { %1270 = vmatprep.mubr.bf16.mxu0 %v4242_v32 }
  0xf2   : > { %v1001_v30 = vpop.permute.xlu0 %1000 }
  0xf3   : > { %v1038_v34 = vpop.permute.xlu1 %1037  ;;  %v1078_v31 = vsel %vm1057_vm1, %v4586_v33, %v1001_v30  ;;  %v3974_v30 = vld [vmem:[%s5230_s4 + $0x94] ss:$8 sps:$4 sm:$0xff]  }
  0xf6   : > { %v1003_v36 = vpop.permute.xlu0 %1002 }
  0xf7   : > { %v1040_v26 = vpop.permute.xlu1 %1039  ;;  %v1081_v33 = vsel %vm1057_vm1, %v4602_v47, %v1003_v36  ;;  %v3946_v47 = vld [vmem:[%s5230_s4 + $0x24] ss:$8 sps:$4 sm:$0xff]   ;;  %v3979_v36 = vld [vmem:[%s5230_s4 + $0x80] ss:$8 sps:$4 sm:$0xff]  }
  0xf8   : > { %3426 = vmatmul.mubr.msk.bf16.gmra.mxu0 %vm1175_vm3, %v1114_v35  ;;  %2006 = vmatprep.subr.bf16.mxu1 %v3946_v47  ;;  %v3977_v35 = vld [vmem:[%s5230_s4 + $0x84] ss:$8 sps:$4 sm:$0xff]  }
  0xf9   : > { %1280 = vmatprep.mubr.bf16.mxu0 %v4242_v32 }
  0xfa   : > { %v1005_v38 = vpop.permute.xlu0 %1004 }
  0xfb   : > { %v1084_v39 = vsel %vm1057_vm1, %v4604_v50, %v1005_v38  ;;  %v1042_v40 = vpop.permute.xlu1 %1041 }
  0xfc   : > { %v1124_v27 = vsel %vm1106_vm2, %v1084_v39, %v1042_v40 }
  0xfe   : > { %v1007_v42 = vpop.permute.xlu0 %1006 }
  0xff   : > { %v1087_v43 = vsel %vm1057_vm1, %v4612_v52, %v1007_v42  ;;  %v1044_v44 = vpop.permute.xlu1 %1043 }
 0x100   : > { %3427 = vmatmul.mubr.msk.bf16.gmra.mxu0 %vm1175_vm3, %v1116_v41  ;;  %v1126_v45 = vsel %vm1106_vm2, %v1087_v43, %v1044_v44 }
 0x101   : > { %1290 = vmatprep.mubr.bf16.mxu0 %v4242_v32 }
 0x102   : > { %v1009_v46 = vpop.permute.xlu0 %1008 }
 0x103   : > { %v1090_v48 = vsel %vm1057_vm1, %v4618_v53, %v1009_v46  ;;  %v1046_v49 = vpop.permute.xlu1 %1045 }
 0x104   : > { %v1128_v50 = vsel %vm1106_vm2, %v1090_v48, %v1046_v49 }
 0x106   : > { %v1011_v52 = vpop.permute.xlu0 %1010 }
 0x107   : > { %v1093_v59 = vsel %vm1057_vm1, %v4624_v54, %v1011_v52  ;;  %v1048_v60 = vpop.permute.xlu1 %1047  ;;  %v1120_v54 = vsel %vm1106_vm2, %v1078_v31, %v1038_v34  ;;  %v3976_v34 = vld [vmem:[%s5230_s4 + $0x90] ss:$8 sps:$4 sm:$0xff]  }
 0x108   : > { %3428 = vmatmul.mubr.msk.bf16.gmra.mxu0 %vm1175_vm3, %v1118_v51  ;;  %v1130_v61 = vsel %vm1106_vm2, %v1093_v59, %v1048_v60 }
 0x109   : > { %1300 = vmatprep.mubr.bf16.mxu0 %v4242_v32 }
 0x10a   : > { %v1013_v53 = vpop.permute.xlu0 %1012 }
 0x10b   : > { %v1096_v62 = vsel %vm1057_vm1, %v4630_v55, %v1013_v53  ;;  %v1050_v63 = vpop.permute.xlu1 %1049 }
 0x10c   : > { %v4739_v0 = vsel %vm1106_vm2, %v1096_v62, %v1050_v63 }
 0x10e   : > { %v1015_v1 = vpop.permute.xlu0 %1014 }
 0x10f   : > { %v1099_v2 = vsel %vm1057_vm1, %v4636_v56, %v1015_v1  ;;  %v1052_v3 = vpop.permute.xlu1 %1051  ;;  %v1122_v56 = vsel %vm1106_vm2, %v1081_v33, %v1040_v26  ;;  %v3986_v26 = vld [vmem:[%s5230_s4 + $0x174] ss:$8 sps:$4 sm:$0xff]  }
 0x110   : > { %3429 = vmatmul.mubr.msk.bf16.gmra.mxu0 %vm1175_vm3, %v1120_v54  ;;  %v4746_v4 = vsel %vm1106_vm2, %v1099_v2, %v1052_v3 }
 0x111   : > { %1310 = vmatprep.mubr.bf16.mxu0 %v4242_v32 }
 0x112   : > { %v1017_v55 = vpop.permute.xlu0 %1016 }
 0x113   : > { %v1102_v5 = vsel %vm1057_vm1, %v4642_v57, %v1017_v55  ;;  %v1054_v6 = vpop.permute.xlu1 %1053  ;;  %v3948_v57 = vld [vmem:[%s5230_s4 + $0x20] ss:$8 sps:$4 sm:$0xff]  }
 0x114   : > { %v4754_v7 = vsel %vm1106_vm2, %v1102_v5, %v1054_v6  ;;  %2007 = vmatpush1.bf16.msra.mxu1 %v3948_v57  ;;  %v3980_v6 = vld [vmem:[#allocation3] sm:$0xff]  }
 0x116   : > { %v1019_v8 = vpop.permute.xlu0 %1018 }
 0x117   : > { %v1105_v9 = vsel %vm1057_vm1, %v4648_v58, %v1019_v8  ;;  %v1056_v10 = vpop.permute.xlu1 %1055  ;;  %v3949_v58 = vld [vmem:[%s5230_s4 + $0x14] ss:$8 sps:$4 sm:$0xff]  }
 0x118   : > { %3430 = vmatmul.mubr.msk.bf16.gmra.mxu0 %vm1175_vm3, %v1122_v56  ;;  %v1138_v11 = vsel %vm1106_vm2, %v1105_v9, %v1056_v10  ;;  %2008 = vmatprep.subr.bf16.mxu1 %v3949_v58 }
 0x119   : > { %1320 = vmatprep.mubr.bf16.mxu0 %v4242_v32  ;;  %2009 = vmatpush1.bf16.msra.mxu1 %v3951_v12  ;;  %v3988_v12 = vld [vmem:[%s5230_s4 + $0x160] ss:$8 sps:$4 sm:$0xff]  }
 0x11a   : > { %2010 = vmatprep.subr.bf16.mxu1 %v3952_v13 }
 0x11d   : > { %2011 = vmatpush1.bf16.msra.mxu1 %v3954_v14 }
 0x11e   : > { %2012 = vmatprep.subr.bf16.mxu1 %v3955_v15  ;;  %v3993_v15 = vld [vmem:[%s5230_s4 + $0x154] ss:$8 sps:$4 sm:$0xff]  }
 0x120   : > { %3431 = vmatmul.mubr.msk.bf16.gmra.mxu0 %vm1175_vm3, %v1124_v27 }
 0x121   : > { %1330 = vmatprep.mubr.bf16.mxu0 %v4242_v32  ;;  %2013 = vmatpush2.bf16.msra.mxu1 %v3957_v16 }
 0x122   : > { %2014 = vmatprep.subr.bf16.mxu1 %v3958_v17 }
 0x125   : > { %2015 = vmatpush2.bf16.msra.mxu1 %v3960_v18 }
 0x126   : > { %2016 = vmatprep.subr.bf16.mxu1 %v3961_v19  ;;  %v3991_v19 = vld [vmem:[%s5230_s4 + $0x150] ss:$8 sps:$4 sm:$0xff]  }
 0x128   : > { %3432 = vmatmul.mubr.msk.bf16.gmra.mxu0 %vm1175_vm3, %v1126_v45 }
 0x129   : > { %1340 = vmatprep.mubr.bf16.mxu0 %v4242_v32  ;;  %2017 = vmatpush2.bf16.msra.mxu1 %v3963_v20  ;;  %v3997_v20 = vld [vmem:[%s5230_s4 + $0x144] ss:$8 sps:$4 sm:$0xff]  }
 0x12a   : > { %2018 = vmatprep.subr.bf16.mxu1 %v3964_v21 }
 0x12d   : > { %2019 = vmatpush2.bf16.msra.mxu1 %v3966_v22 }
 0x12e   : > { %2020 = vmatprep.subr.bf16.mxu1 %v3967_v23 }
 0x130   : > { %3433 = vmatmul.mubr.msk.bf16.gmra.mxu0 %vm1175_vm3, %v1128_v50 }
 0x131   : > { %1350 = vmatprep.mubr.bf16.mxu0 %v4242_v32  ;;  %2021 = vmatpush2.bf16.msra.mxu1 %v3969_v24 }
 0x132   : > { %2022 = vmatprep.subr.bf16.mxu1 %v3970_v25  ;;  %v3995_v25 = vld [vmem:[%s5230_s4 + $0x140] ss:$8 sps:$4 sm:$0xff]  }
 0x135   : > { %2023 = vmatpush2.bf16.msra.mxu1 %v3972_v29 }
 0x136   : > { %2024 = vmatprep.subr.bf16.mxu1 %v3974_v30  ;;  %v4000_v30 = vld [vmem:[%s5230_s4 + $0x134] ss:$8 sps:$4 sm:$0xff]  }
 0x138   : > { %3434 = vmatmul.mubr.msk.bf16.gmra.mxu0 %vm1175_vm3, %v1130_v61 }
 0x139   : > { %1360 = vmatprep.mubr.bf16.mxu0 %v4242_v32  ;;  %2025 = vmatpush2.bf16.msra.mxu1 %v3976_v34 }
 0x13a   : > { %2026 = vmatprep.subr.bf16.mxu1 %v3977_v35 }
 0x13d   : > { %2027 = vmatpush2.bf16.msra.mxu1 %v3979_v36 }
 0x13e   : > { %2109 = vmatprep.subr.bf16.mxu1 %v3986_v26  ;;  %v3998_v26 = vld [vmem:[%s5230_s4 + $0x130] ss:$8 sps:$4 sm:$0xff]  }
 0x140   : > { %3435 = vmatmul.mubr.msk.bf16.gmra.mxu0 %vm1175_vm3, %v4739_v0 }
 0x141   : > { %1370 = vmatprep.mubr.bf16.mxu0 %v4242_v32 }
 0x148   : > { %3436 = vmatmul.mubr.msk.bf16.gmra.mxu0 %vm1175_vm3, %v4746_v4 }
 0x149   : > { %1380 = vmatprep.mubr.bf16.mxu0 %v4242_v32 }
 0x150   : > { %3437 = vmatmul.mubr.msk.bf16.gmra.mxu0 %vm1175_vm3, %v4754_v7  ;;  %v3984_v7 = vld [vmem:[%s5230_s4 + $0x170] ss:$8 sps:$4 sm:$0xff]  }
 0x151   : > { %1390 = vmatprep.mubr.bf16.mxu0 %v4242_v32 }
 0x158   : > { %3438 = vmatmul.mubr.msk.bf16.gmra.mxu0 %vm1175_vm3, %v1138_v11  ;;  %v3990_v11 = vld [vmem:[%s5230_s4 + $0x164] ss:$8 sps:$4 sm:$0xff]  }
 0x1a0   : > { %v1242_v37 = vpop.f32.mrf.mxu0 }
 0x1a2   : > { %v1244_v38 = vpop.f32.mrf.mxu0 }
 0x1a4   : > { %v1246_v39 = vpop.f32.mrf.mxu0 }
 0x1a6   : > { %v1248_v40 = vpop.f32.mrf.mxu0 }
 0x1a8   : > { %v1252_v27 = vpop.f32.mrf.mxu0 }
 0x1a9   : > { %v1401_v42 = vmax.f32 %v1242_v37, %v1252_v27  ;;  %v4004_v27 = vld [vmem:[%s5230_s4 + $0x124] ss:$8 sps:$4 sm:$0xff]  }
 0x1aa   : > { %v1254_v41 = vpop.f32.mrf.mxu0 }
 0x1ab   : > { %v1402_v43 = vmax.f32 %v1244_v38, %v1254_v41 }
 0x1ac   : > { %v1256_v44 = vpop.f32.mrf.mxu0 }
 0x1ad   : > { %v1433_v45 = vmax.f32 %v1401_v42, %v1402_v43  ;;  %v1403_v48 = vmax.f32 %v1246_v39, %v1256_v44  ;;  %v4002_v44 = vld [vmem:[%s5230_s4 + $0x120] ss:$8 sps:$4 sm:$0xff]  }
 0x1ae   : > { %v1258_v46 = vpop.f32.mrf.mxu0 }
 0x1af   : > { %v1404_v49 = vmax.f32 %v1248_v40, %v1258_v46  ;;  %v1456_v51 = vadd.f32 %v4852_v28, %v1433_v45 }
 0x1b0   : > { %v1262_v50 = vpop.f32.mrf.mxu0 }
 0x1b1   : > { %v1434_v52 = vmax.f32 %v1403_v48, %v1404_v49  ;;  %v1472_v31 = vmax.f32 %v1456_v51, 0.0  ;;  %v4007_v48 = vld [vmem:[%s5230_s4 + $0x114] ss:$8 sps:$4 sm:$0xff]  }
 0x1b2   : > { %v1264_v59 = vpop.f32.mrf.mxu0 }
 0x1b3   : > { %v1457_v60 = vadd.f32 %v4852_v28, %v1434_v52  ;;  %v4005_v52 = vld [vmem:[%s5230_s4 + $0x110] ss:$8 sps:$4 sm:$0xff]  }
 0x1b4   : > { %v1266_v61 = vpop.f32.mrf.mxu0 }
 0x1b5   : > { %v1473_v53 = vmax.f32 %v1457_v60, 0.0 }
 0x1b6   : > { %v1268_v62 = vpop.f32.mrf.mxu0 }
 0x1b7   : > { %v3677_v63 = vpack.c.bf16 %v1473_v53, %v1472_v31 }
 0x1b8   : > { %v1272_v0 = vpop.f32.mrf.mxu0 }
 0x1b9   : > { %3734 = vst [vmem:[#allocation3 + $0x8] sm:$0xff] %v3677_v63   ;;  %v1405_v1 = vmax.f32 %v1262_v50, %v1272_v0 }
 0x1ba   : > { %v1274_v54 = vpop.f32.mrf.mxu0 }
 0x1bb   : > { %v1406_v2 = vmax.f32 %v1264_v59, %v1274_v54  ;;  %v4011_v59 = vld [vmem:[%s5230_s4 + $0x104] ss:$8 sps:$4 sm:$0xff]  }
 0x1bc   : > { %v1276_v3 = vpop.f32.mrf.mxu0 }
 0x1bd   : > { %v1435_v4 = vmax.f32 %v1405_v1, %v1406_v2  ;;  %v1407_v55 = vmax.f32 %v1266_v61, %v1276_v3 }
 0x1be   : > { %v1278_v33 = vpop.f32.mrf.mxu0 }
 0x1bf   : > { %v1408_v5 = vmax.f32 %v1268_v62, %v1278_v33  ;;  %v1458_v9 = vadd.f32 %v4852_v28, %v1435_v4  ;;  %v4009_v62 = vld [vmem:[%s5230_s4 + $0x100] ss:$8 sps:$4 sm:$0xff]  }
 0x1c0   : > { %v1282_v56 = vpop.f32.mrf.mxu0  ;;  %v3973_v8 = vld [vmem:[#allocation3 + $0x8] sm:$0xff]  }
 0x1c1   : > { %v1436_v10 = vmax.f32 %v1407_v55, %v1408_v5  ;;  %2028 = vmatprep.mubr.bf16.mxu1 %v3973_v8  ;;  %v1474_v13 = vmax.f32 %v1458_v9, 0.0 }
 0x1c2   : > { %v1284_v47 = vpop.f32.mrf.mxu0  ;;  %2029 = vmatmul.mubr.bf16.vlgmr.msra.gmra.mxu1 %v3980_v6 }
 0x1c3   : > { %v1459_v57 = vadd.f32 %v4852_v28, %v1436_v10  ;;  %2110 = vmatpush1.bf16.msra.mxu1 %v3984_v7 }
 0x1c4   : > { %v1286_v58 = vpop.f32.mrf.mxu0  ;;  %2111 = vmatprep.subr.bf16.mxu1 %v3990_v11 }
 0x1c5   : > { %v1475_v14 = vmax.f32 %v1459_v57, 0.0 }
 0x1c6   : > { %v1288_v16 = vpop.f32.mrf.mxu0 }
 0x1c7   : > { %v3682_v17 = vpack.c.bf16 %v1475_v14, %v1474_v13  ;;  %2112 = vmatpush1.bf16.msra.mxu1 %v3988_v12 }
 0x1c8   : > { %v1292_v18 = vpop.f32.mrf.mxu0  ;;  %2113 = vmatprep.subr.bf16.mxu1 %v3993_v15 }
 0x1c9   : > { %3735 = vst [vmem:[#allocation3 + $0x10] sm:$0xff] %v3682_v17   ;;  %v1409_v22 = vmax.f32 %v1282_v56, %v1292_v18 }
 0x1ca   : > { %v1294_v21 = vpop.f32.mrf.mxu0 }
 0x1cb   : > { %v1410_v23 = vmax.f32 %v1284_v47, %v1294_v21  ;;  %2114 = vmatpush1.bf16.msra.mxu1 %v3991_v19 }
 0x1cc   : > { %v1296_v24 = vpop.f32.mrf.mxu0  ;;  %2115 = vmatprep.subr.bf16.mxu1 %v3997_v20 }
 0x1cd   : > { %v1437_v29 = vmax.f32 %v1409_v22, %v1410_v23  ;;  %v1411_v35 = vmax.f32 %v1286_v58, %v1296_v24 }
 0x1ce   : > { %v1298_v34 = vpop.f32.mrf.mxu0 }
 0x1cf   : > { %v1412_v36 = vmax.f32 %v1288_v16, %v1298_v34  ;;  %2116 = vmatpush1.bf16.msra.mxu1 %v3995_v25  ;;  %v1460_v39 = vadd.f32 %v4852_v28, %v1437_v29 }
 0x1d0   : > { %v1302_v37 = vpop.f32.mrf.mxu0  ;;  %v3981_v38 = vld [vmem:[#allocation3 + $0x10] sm:$0xff]   ;;  %2117 = vmatprep.subr.bf16.mxu1 %v4000_v30 }
 0x1d1   : > { %v1438_v40 = vmax.f32 %v1411_v35, %v1412_v36  ;;  %2038 = vmatprep.mubr.bf16.mxu1 %v3981_v38  ;;  %v1476_v45 = vmax.f32 %v1460_v39, 0.0 }
 0x1d2   : > { %v1304_v41 = vpop.f32.mrf.mxu0  ;;  %2039 = vmatmul.mubr.bf16.gmra.mxu1 %v3973_v8 }
 0x1d3   : > { %v1461_v42 = vadd.f32 %v4852_v28, %v1438_v40  ;;  %2118 = vmatpush1.bf16.msra.mxu1 %v3998_v26 }
 0x1d4   : > { %v1306_v43 = vpop.f32.mrf.mxu0  ;;  %2119 = vmatprep.subr.bf16.mxu1 %v4004_v27 }
 0x1d5   : > { %v1477_v46 = vmax.f32 %v1461_v42, 0.0 }
 0x1d6   : > { %v1308_v49 = vpop.f32.mrf.mxu0 }
 0x1d7   : > { %v3687_v50 = vpack.c.bf16 %v1477_v46, %v1476_v45  ;;  %2120 = vmatpush1.bf16.msra.mxu1 %v4002_v44 }
 0x1d8   : > { %v1312_v51 = vpop.f32.mrf.mxu0  ;;  %2121 = vmatprep.subr.bf16.mxu1 %v4007_v48 }
 0x1d9   : > { %3736 = vst [vmem:[#allocation3 + $0x18] sm:$0xff] %v3687_v50   ;;  %v1413_v61 = vmax.f32 %v1302_v37, %v1312_v51 }
 0x1da   : > { %v1314_v60 = vpop.f32.mrf.mxu0 }
 0x1db   : > { %v1414_v31 = vmax.f32 %v1304_v41, %v1314_v60  ;;  %2122 = vmatpush1.bf16.msra.mxu1 %v4005_v52 }
 0x1dc   : > { %v1316_v53 = vpop.f32.mrf.mxu0  ;;  %2123 = vmatprep.subr.bf16.mxu1 %v4011_v59 }
 0x1dd   : > { %v1439_v63 = vmax.f32 %v1413_v61, %v1414_v31  ;;  %v1415_v54 = vmax.f32 %v1306_v43, %v1316_v53 }
 0x1de   : > { %v1318_v0 = vpop.f32.mrf.mxu0 }
 0x1df   : > { %v1416_v1 = vmax.f32 %v1308_v49, %v1318_v0  ;;  %2124 = vmatpush1.bf16.msra.mxu1 %v4009_v62  ;;  %v1462_v4 = vadd.f32 %v4852_v28, %v1439_v63 }
 0x1e0   : > { %v1322_v2 = vpop.f32.mrf.mxu0  ;;  %v3982_v3 = vld [vmem:[#allocation3 + $0x18] sm:$0xff]  }
 0x1e1   : > { %v1440_v33 = vmax.f32 %v1415_v54, %v1416_v1  ;;  %2048 = vmatprep.mubr.bf16.mxu1 %v3982_v3  ;;  %v1478_v7 = vmax.f32 %v1462_v4, 0.0 }
 0x1e2   : > { %v1324_v55 = vpop.f32.mrf.mxu0  ;;  %2049 = vmatmul.mubr.bf16.gmra.mxu1 %v3981_v38 }
 0x1e3   : > { %v1463_v5 = vadd.f32 %v4852_v28, %v1440_v33 }
 0x1e4   : > { %v1326_v6 = vpop.f32.mrf.mxu0 }
 0x1e5   : > { %v1479_v56 = vmax.f32 %v1463_v5, 0.0 }
 0x1e6   : > { %v1328_v8 = vpop.f32.mrf.mxu0 }
 0x1e7   : > { %v3692_v9 = vpack.c.bf16 %v1479_v56, %v1478_v7 }
 0x1e8   : > { %v1332_v10 = vpop.f32.mrf.mxu0 }
 0x1e9   : > { %3737 = vst [vmem:[#allocation3 + $0x20] sm:$0xff] %v3692_v9   ;;  %v1417_v47 = vmax.f32 %v1322_v2, %v1332_v10 }
 0x1ea   : > { %v1334_v11 = vpop.f32.mrf.mxu0 }
 0x1eb   : > { %v1418_v57 = vmax.f32 %v1324_v55, %v1334_v11 }
 0x1ec   : > { %v1336_v58 = vpop.f32.mrf.mxu0 }
 0x1ed   : > { %v1441_v12 = vmax.f32 %v1417_v47, %v1418_v57  ;;  %v1419_v14 = vmax.f32 %v1326_v6, %v1336_v58 }
 0x1ee   : > { %v1338_v13 = vpop.f32.mrf.mxu0 }
 0x1ef   : > { %v1420_v15 = vmax.f32 %v1328_v8, %v1338_v13  ;;  %v1464_v18 = vadd.f32 %v4852_v28, %v1441_v12 }
 0x1f0   : > { %v1342_v16 = vpop.f32.mrf.mxu0  ;;  %v3983_v17 = vld [vmem:[#allocation3 + $0x20] sm:$0xff]  }
 0x1f1   : > { %v1442_v19 = vmax.f32 %v1419_v14, %v1420_v15  ;;  %2058 = vmatprep.mubr.bf16.mxu1 %v3983_v17  ;;  %v1480_v23 = vmax.f32 %v1464_v18, 0.0 }
 0x1f2   : > { %v1344_v20 = vpop.f32.mrf.mxu0  ;;  %2059 = vmatmul.mubr.bf16.gmra.mxu1 %v3982_v3 }
 0x1f3   : > { %v1465_v21 = vadd.f32 %v4852_v28, %v1442_v19 }
 0x1f4   : > { %v1346_v22 = vpop.f32.mrf.mxu0 }
 0x1f5   : > { %v1481_v24 = vmax.f32 %v1465_v21, 0.0 }
 0x1f6   : > { %v1348_v25 = vpop.f32.mrf.mxu0 }
 0x1f7   : > { %v3697_v29 = vpack.c.bf16 %v1481_v24, %v1480_v23  ;;  %v4022_v23 = vld [vmem:[%s5232_s6 + $0x74] ss:$8 sps:$4 sm:$0xff]   ;;  %v4012_v24 = vld [vmem:[#allocation3 + $0x10] sm:$0xff]  }
 0x1f8   : > { %v1352_v30 = vpop.f32.mrf.mxu0  ;;  %2673 = vmatprep.subr.bf16.mxu0 %v4022_v23 }
 0x1f9   : > { %3738 = vst [vmem:[#allocation3 + $0x28] sm:$0xff] %v3697_v29   ;;  %v1421_v35 = vmax.f32 %v1342_v16, %v1352_v30  ;;  %v4013_v29 = vld [vmem:[#allocation3 + $0x18] sm:$0xff]   ;;  %v4026_v30 = vld [vmem:[%s5232_s6 + $0x50] ss:$8 sps:$4 sm:$0xff]  }
 0x1fa   : > { %v1354_v34 = vpop.f32.mrf.mxu0 }
 0x1fb   : > { %v1422_v36 = vmax.f32 %v1344_v20, %v1354_v34  ;;  %v4028_v34 = vld [vmem:[%s5232_s6 + $0x54] ss:$8 sps:$4 sm:$0xff]  }
 0x1fc   : > { %v1356_v26 = vpop.f32.mrf.mxu0 }
 0x1fd   : > { %v1443_v37 = vmax.f32 %v1421_v35, %v1422_v36  ;;  %v1423_v39 = vmax.f32 %v1346_v22, %v1356_v26  ;;  %v4020_v22 = vld [vmem:[%s5232_s6 + $0x70] ss:$8 sps:$4 sm:$0xff]   ;;  %v4031_v36 = vld [vmem:[%s5232_s6 + $0x44] ss:$8 sps:$4 sm:$0xff]   ;;  %v4029_v26 = vld [vmem:[%s5232_s6 + $0x40] ss:$8 sps:$4 sm:$0xff]  }
 0x1fe   : > { %v1358_v38 = vpop.f32.mrf.mxu0  ;;  %2674 = vmatpush1.bf16.msra.mxu0 %v4020_v22  ;;  %v4014_v35 = vld [vmem:[#allocation3 + $0x20] sm:$0xff]  }
 0x1ff   : > { %v1424_v40 = vmax.f32 %v1348_v25, %v1358_v38  ;;  %v1466_v42 = vadd.f32 %v4852_v28, %v1443_v37  ;;  %v4023_v25 = vld [vmem:[%s5232_s6 + $0x60] ss:$8 sps:$4 sm:$0xff]   ;;  %v4032_v38 = vld [vmem:[%s5232_s6 + $0x30] ss:$8 sps:$4 sm:$0xff]  }
 0x200   : > { %v1362_v27 = vpop.f32.mrf.mxu0  ;;  %v3987_v41 = vld [vmem:[#allocation3 + $0x28] sm:$0xff]  }
 0x201   : > { %v1444_v43 = vmax.f32 %v1423_v39, %v1424_v40  ;;  %2068 = vmatprep.mubr.bf16.mxu1 %v3987_v41  ;;  %v1482_v48 = vmax.f32 %v1466_v42, 0.0  ;;  %v4015_v37 = vld [vmem:[#allocation3 + $0x28] sm:$0xff]  }
 0x202   : > { %v1364_v44 = vpop.f32.mrf.mxu0  ;;  %2069 = vmatmul.mubr.bf16.gmra.mxu1 %v3983_v17  ;;  %v4034_v39 = vld [vmem:[%s5232_s6 + $0x34] ss:$8 sps:$4 sm:$0xff]  }
 0x203   : > { %v1467_v45 = vadd.f32 %v4852_v28, %v1444_v43  ;;  %v4038_v43 = vld [vmem:[%s5232_s6 + $0x10] ss:$8 sps:$4 sm:$0xff]  }
 0x204   : > { %v1366_v46 = vpop.f32.mrf.mxu0 }
 0x205   : > { %v1483_v49 = vmax.f32 %v1467_v45, 0.0 }
 0x206   : > { %v1368_v50 = vpop.f32.mrf.mxu0 }
 0x207   : > { %v3702_v51 = vpack.c.bf16 %v1483_v49, %v1482_v48  ;;  %v4041_v48 = vld [vmem:[%s5232_s6] ss:$8 sps:$4 sm:$0xff]   ;;  %v4019_v49 = vld [vmem:[#allocation3 + $0x48] sm:$0xff]  }
 0x208   : > { %v1372_v52 = vpop.f32.mrf.mxu0 }
 0x209   : > { %3739 = vst [vmem:[#allocation3 + $0x30] sm:$0xff] %v3702_v51   ;;  %v1425_v60 = vmax.f32 %v1362_v27, %v1372_v52  ;;  %v4037_v27 = vld [vmem:[%s5232_s6 + $0x24] ss:$8 sps:$4 sm:$0xff]   ;;  %v4046_v51 = vld [vmem:[%s5232_s6 + $0xf4] ss:$8 sps:$4 sm:$0xff]  }
 0x20a   : > { %v1374_v59 = vpop.f32.mrf.mxu0  ;;  %v4047_v52 = vld [vmem:[%s5232_s6 + $0xe0] ss:$8 sps:$4 sm:$0xff]  }
 0x20b   : > { %v1426_v61 = vmax.f32 %v1364_v44, %v1374_v59  ;;  %v4040_v44 = vld [vmem:[%s5232_s6 + $0x14] ss:$8 sps:$4 sm:$0xff]   ;;  %v4049_v59 = vld [vmem:[%s5232_s6 + $0xe4] ss:$8 sps:$4 sm:$0xff]  }
 0x20c   : > { %v1376_v31 = vpop.f32.mrf.mxu0 }
 0x20d   : > { %v1445_v53 = vmax.f32 %v1425_v60, %v1426_v61  ;;  %v1427_v63 = vmax.f32 %v1366_v46, %v1376_v31  ;;  %v4043_v46 = vld [vmem:[%s5232_s6 + $0x4] ss:$8 sps:$4 sm:$0xff]   ;;  %v4050_v60 = vld [vmem:[%s5232_s6 + $0xd0] ss:$8 sps:$4 sm:$0xff]   ;;  %v4052_v61 = vld [vmem:[%s5232_s6 + $0xd4] ss:$8 sps:$4 sm:$0xff]  }
 0x20e   : > { %v1378_v62 = vpop.f32.mrf.mxu0 }
 0x20f   : > { %v1428_v0 = vmax.f32 %v1368_v50, %v1378_v62  ;;  %v1468_v2 = vadd.f32 %v4852_v28, %v1445_v53  ;;  %v4044_v50 = vld [vmem:[%s5232_s6 + $0xf0] ss:$8 sps:$4 sm:$0xff]   ;;  %v4055_v62 = vld [vmem:[%s5232_s6 + $0xc4] ss:$8 sps:$4 sm:$0xff]  }
 0x210   : > { %v1382_v54 = vpop.f32.mrf.mxu0  ;;  %v3994_v1 = vld [vmem:[#allocation3 + $0x30] sm:$0xff]  }
 0x211   : > { %v1446_v3 = vmax.f32 %v1427_v63, %v1428_v0  ;;  %2078 = vmatprep.mubr.bf16.mxu1 %v3994_v1  ;;  %v1484_v5 = vmax.f32 %v1468_v2, 0.0  ;;  %v4016_v40 = vld [vmem:[#allocation3 + $0x30] sm:$0xff]  }
 0x212   : > { %v1384_v4 = vpop.f32.mrf.mxu0  ;;  %2079 = vmatmul.mubr.bf16.gmra.mxu1 %v3987_v41  ;;  %v4035_v41 = vld [vmem:[%s5232_s6 + $0x20] ss:$8 sps:$4 sm:$0xff]  }
 0x213   : > { %v1469_v33 = vadd.f32 %v4852_v28, %v1446_v3  ;;  %v4053_v63 = vld [vmem:[%s5232_s6 + $0xc0] ss:$8 sps:$4 sm:$0xff]   ;;  %v4061_v3 = vld [vmem:[%s5232_s6 + $0xa4] ss:$8 sps:$4 sm:$0xff]  }
 0x214   : > { %v1386_v55 = vpop.f32.mrf.mxu0 }
 0x215   : > { %v1485_v6 = vmax.f32 %v1469_v33, 0.0 }
 0x216   : > { %v1388_v7 = vpop.f32.mrf.mxu0 }
 0x217   : > { %v3707_v56 = vpack.c.bf16 %v1485_v6, %v1484_v5  ;;  %v4063_v5 = vld [vmem:[%s5232_s6 + $0x90] ss:$8 sps:$4 sm:$0xff]  }
 0x218   : > { %v1392_v8 = vpop.f32.mrf.mxu0 }
 0x219   : > { %3740 = vst [vmem:[#allocation3 + $0x38] sm:$0xff] %v3707_v56   ;;  %v1429_v10 = vmax.f32 %v1382_v54, %v1392_v8  ;;  %v4058_v54 = vld [vmem:[%s5232_s6 + $0xb4] ss:$8 sps:$4 sm:$0xff]   ;;  %v4066_v56 = vld [vmem:[%s5232_s6 + $0x80] ss:$8 sps:$4 sm:$0xff]  }
 0x21a   : > { %v1394_v9 = vpop.f32.mrf.mxu0 }
 0x21b   : > { %v1430_v11 = vmax.f32 %v1384_v4, %v1394_v9  ;;  %v4059_v4 = vld [vmem:[%s5232_s6 + $0xa0] ss:$8 sps:$4 sm:$0xff]  }
 0x21c   : > { %v1396_v47 = vpop.f32.mrf.mxu0 }
 0x21d   : > { %v1447_v57 = vmax.f32 %v1429_v10, %v1430_v11  ;;  %v1431_v12 = vmax.f32 %v1386_v55, %v1396_v47  ;;  %v4065_v55 = vld [vmem:[%s5232_s6 + $0x94] ss:$8 sps:$4 sm:$0xff]  }
 0x21e   : > { %v1398_v58 = vpop.f32.mrf.mxu0 }
 0x21f   : > { %v1432_v13 = vmax.f32 %v1388_v7, %v1398_v58  ;;  %v1470_v15 = vadd.f32 %v4852_v28, %v1447_v57  ;;  %v4068_v7 = vld [vmem:[%s5232_s6 + $0x84] ss:$8 sps:$4 sm:$0xff]   ;;  %v4073_v57 = vld [vmem:[%s5232_s6 + $0x174] ss:$8 sps:$4 sm:$0xff]  }
 0x220   : > { %v4001_v14 = vld [vmem:[#allocation3 + $0x38] sm:$0xff]  }
 0x221   : > { %v1448_v16 = vmax.f32 %v1431_v12, %v1432_v13  ;;  %2088 = vmatprep.mubr.bf16.mxu1 %v4001_v14  ;;  %v1486_v18 = vmax.f32 %v1470_v15, 0.0  ;;  %v4017_v42 = vld [vmem:[#allocation3 + $0x38] sm:$0xff]  }
 0x222   : > { %2089 = vmatmul.mubr.bf16.gmra.mxu1 %v3994_v1  ;;  %v4056_v1 = vld [vmem:[%s5232_s6 + $0xb0] ss:$8 sps:$4 sm:$0xff]  }
 0x223   : > { %v1471_v17 = vadd.f32 %v4852_v28, %v1448_v16  ;;  %v4025_v28 = vld [vmem:[%s5232_s6 + $0x64] ss:$8 sps:$4 sm:$0xff]  }
 0x224   : > { %2675 = vmatprep.subr.bf16.mxu0 %v4025_v28 }
 0x225   : > { %v1487_v19 = vmax.f32 %v1471_v17, 0.0  ;;  %2676 = vmatpush1.bf16.msra.mxu0 %v4023_v25 }
 0x226   : > { %2677 = vmatprep.subr.bf16.mxu0 %v4028_v34 }
 0x227   : > { %v3712_v20 = vpack.c.bf16 %v1487_v19, %v1486_v18 }
 0x229   : > { %3741 = vst [vmem:[#allocation3 + $0x40] sm:$0xff] %v3712_v20   ;;  %2678 = vmatpush1.bf16.msra.mxu0 %v4026_v30 }
 0x22a   : > { %2679 = vmatprep.subr.bf16.mxu0 %v4031_v36 }
 0x22d   : > { %2680 = vmatpush1.bf16.msra.mxu0 %v4029_v26 }
 0x22e   : > { %2681 = vmatprep.subr.bf16.mxu0 %v4034_v39 }
 0x230   : > { %v4008_v21 = vld [vmem:[#allocation3 + $0x40] sm:$0xff]  }
 0x231   : > { %2098 = vmatprep.mubr.bf16.mxu1 %v4008_v21  ;;  %2682 = vmatpush1.bf16.msra.mxu0 %v4032_v38  ;;  %v4018_v45 = vld [vmem:[#allocation3 + $0x40] sm:$0xff]  }
 0x232   : > { %2099 = vmatmul.mubr.bf16.gmra.mxu1 %v4001_v14  ;;  %2683 = vmatprep.subr.bf16.mxu0 %v4037_v27 }
 0x233   : > { %2141 = vmatprep.mubr.bf16.mxu1 %v4242_v32 }
 0x235   : > { %2684 = vmatpush1.bf16.msra.mxu0 %v4035_v41 }
 0x236   : > { %2685 = vmatprep.subr.bf16.mxu0 %v4040_v44 }
 0x239   : > { %2686 = vmatpush1.bf16.msra.mxu0 %v4038_v43 }
 0x23a   : > { %2142 = vmatmul.mubr.bf16.vlgmr.msra.gmra.mxu1 %v4012_v24  ;;  %2687 = vmatprep.subr.bf16.mxu0 %v4043_v46 }
 0x23b   : > { %2151 = vmatprep.mubr.bf16.mxu1 %v4242_v32 }
 0x23d   : > { %2688 = vmatpush1.bf16.msra.mxu0 %v4041_v48 }
 0x23e   : > { %2689 = vmatprep.subr.bf16.mxu0 %v4046_v51 }
 0x241   : > { %2690 = vmatpush2.bf16.msra.mxu0 %v4044_v50 }
 0x242   : > { %2152 = vmatmul.mubr.bf16.gmra.mxu1 %v4013_v29  ;;  %2691 = vmatprep.subr.bf16.mxu0 %v4049_v59 }
 0x243   : > { %2161 = vmatprep.mubr.bf16.mxu1 %v4242_v32 }
 0x245   : > { %2692 = vmatpush2.bf16.msra.mxu0 %v4047_v52 }
 0x246   : > { %2693 = vmatprep.subr.bf16.mxu0 %v4052_v61  ;;  %v5069_v61 = vld [vmem:[%s5231_s5] ss:$0 sm:$0xff] }
 0x249   : > { %2694 = vmatpush2.bf16.msra.mxu0 %v4050_v60 }
 0x24a   : > { %2162 = vmatmul.mubr.bf16.gmra.mxu1 %v4014_v35  ;;  %2695 = vmatprep.subr.bf16.mxu0 %v4055_v62 }
 0x24b   : > { %2171 = vmatprep.mubr.bf16.mxu1 %v4242_v32 }
 0x24d   : > { %2696 = vmatpush2.bf16.msra.mxu0 %v4053_v63 }
 0x24e   : > { %2697 = vmatprep.subr.bf16.mxu0 %v4058_v54 }
 0x251   : > { %2698 = vmatpush2.bf16.msra.mxu0 %v4056_v1 }
 0x252   : > { %2172 = vmatmul.mubr.bf16.gmra.mxu1 %v4015_v37  ;;  %2699 = vmatprep.subr.bf16.mxu0 %v4061_v3 }
 0x253   : > { %2181 = vmatprep.mubr.bf16.mxu1 %v4242_v32 }
 0x255   : > { %2700 = vmatpush2.bf16.msra.mxu0 %v4059_v4 }
 0x256   : > { %2701 = vmatprep.subr.bf16.mxu0 %v4065_v55 }
 0x259   : > { %2702 = vmatpush2.bf16.msra.mxu0 %v4063_v5 }
 0x25a   : > { %2182 = vmatmul.mubr.bf16.gmra.mxu1 %v4016_v40  ;;  %2703 = vmatprep.subr.bf16.mxu0 %v4068_v7 }
 0x25b   : > { %2191 = vmatprep.mubr.bf16.mxu1 %v4242_v32 }
 0x25d   : > { %2704 = vmatpush2.bf16.msra.mxu0 %v4066_v56 }
 0x25e   : > { %2746 = vmatprep.subr.bf16.mxu0 %v4073_v57 }
 0x262   : > { %2192 = vmatmul.mubr.bf16.gmra.mxu1 %v4017_v42 }
 0x263   : > { %2201 = vmatprep.mubr.bf16.mxu1 %v4242_v32 }
 0x26a   : > { %2202 = vmatmul.mubr.bf16.gmra.mxu1 %v4018_v45 }
 0x26b   : > { %2211 = vmatprep.mubr.bf16.mxu1 %v4242_v32 }
 0x272   : > { %2212 = vmatmul.mubr.bf16.gmra.mxu1 %v4019_v49 }
 0x282   : > { %v4989_v31 = vpop.f32.mrf.mxu1 }
 0x284   : > { %v2032_v53 = vpop.f32.mrf.mxu1 }
 0x286   : > { %v4997_v0 = vpop.f32.mrf.mxu1 }
 0x288   : > { %v2036_v2 = vpop.f32.mrf.mxu1 }
 0x292   : > { %v2040_v33 = vpop.f32.mrf.mxu1 }
 0x294   : > { %v2042_v6 = vpop.f32.mrf.mxu1 }
 0x296   : > { %v2044_v8 = vpop.f32.mrf.mxu1 }
 0x298   : > { %v2046_v9 = vpop.f32.mrf.mxu1 }
 0x2a2   : > { %v2050_v10 = vpop.f32.mrf.mxu1 }
 0x2a4   : > { %v2052_v11 = vpop.f32.mrf.mxu1 }
 0x2a6   : > { %v5023_v47 = vpop.f32.mrf.mxu1 }
 0x2a8   : > { %v5028_v58 = vpop.f32.mrf.mxu1 }
 0x2b2   : > { %v2060_v12 = vpop.f32.mrf.mxu1 }
 0x2b4   : > { %v2062_v13 = vpop.f32.mrf.mxu1 }
 0x2b6   : > { %v2064_v14 = vpop.f32.mrf.mxu1 }
 0x2b8   : > { %v5030_v15 = vpop.f32.mrf.mxu1 }
 0x2c2   : > { %v5032_v16 = vpop.f32.mrf.mxu1 }
 0x2c4   : > { %v5034_v17 = vpop.f32.mrf.mxu1 }
 0x2c6   : > { %v5036_v18 = vpop.f32.mrf.mxu1 }
 0x2c8   : > { %v5038_v19 = vpop.f32.mrf.mxu1 }
 0x2d2   : > { %v5040_v20 = vpop.f32.mrf.mxu1 }
 0x2d4   : > { %v5042_v21 = vpop.f32.mrf.mxu1 }
 0x2d6   : > { %v5044_v22 = vpop.f32.mrf.mxu1 }
 0x2d8   : > { %v5046_v23 = vpop.f32.mrf.mxu1 }
 0x2e2   : > { %v5048_v24 = vpop.f32.mrf.mxu1 }
 0x2e4   : > { %v5050_v28 = vpop.f32.mrf.mxu1 }
 0x2e6   : > { %v5052_v25 = vpop.f32.mrf.mxu1 }
 0x2e8   : > { %v5054_v29 = vpop.f32.mrf.mxu1 }
 0x2f2   : > { %v5056_v30 = vpop.f32.mrf.mxu1 }
 0x2f4   : > { %v5058_v34 = vpop.f32.mrf.mxu1 }
 0x2f6   : > { %v5060_v35 = vpop.f32.mrf.mxu1 }
 0x2f8   : > { %v5062_v36 = vpop.f32.mrf.mxu1 }
 0x2fa   : > { %v2143_v26 = vpop.f32.mrf.mxu1 }
 0x2fb   : > { %v2144_v42 = vadd.f32 %v2143_v26, %v4989_v31 }
 0x2fc   : > { %v2145_v37 = vpop.f32.mrf.mxu1 }
 0x2fd   : > { %v2146_v43 = vadd.f32 %v2145_v37, %v2032_v53 }
 0x2fe   : > { %v2147_v38 = vpop.f32.mrf.mxu1 }
 0x2ff   : > { %v2148_v51 = vadd.f32 %v2147_v38, %v4997_v0 }
 0x300   : > { %v2149_v39 = vpop.f32.mrf.mxu1 }
 0x301   : > { %v2150_v52 = vadd.f32 %v2149_v39, %v2036_v2 }
 0x302   : > { %v2153_v40 = vpop.f32.mrf.mxu1 }
 0x303   : > { %v2154_v27 = vadd.f32 %v2153_v40, %v2040_v33 }
 0x304   : > { %v2155_v41 = vpop.f32.mrf.mxu1 }
 0x305   : > { %v2156_v44 = vadd.f32 %v2155_v41, %v2042_v6  ;;  %v2222_v46 = vmax.f32 %v2144_v42, %v2154_v27 }
 0x306   : > { %v2157_v45 = vpop.f32.mrf.mxu1 }
 0x307   : > { %v2223_v48 = vmax.f32 %v2146_v43, %v2156_v44  ;;  %v2158_v49 = vadd.f32 %v2157_v45, %v2044_v8  ;;  %v4069_v45 = vld [vmem:[#allocation4] sm:$0xff]  }
 0x308   : > { %v2159_v50 = vpop.f32.mrf.mxu1 }
 0x309   : > { %v2238_v59 = vmax.f32 %v2222_v46, %v2223_v48  ;;  %v2160_v60 = vadd.f32 %v2159_v50, %v2046_v9  ;;  %v2224_v63 = vmax.f32 %v2148_v51, %v2158_v49  ;;  %v4074_v49 = vld [vmem:[%s5232_s6 + $0x160] ss:$8 sps:$4 sm:$0xff]  }
 0x30a   : > { %v2163_v62 = vpop.f32.mrf.mxu1 }
 0x30b   : > { %v2225_v31 = vmax.f32 %v2150_v52, %v2160_v60  ;;  %v2253_v54 = vadd.f32 %v5069_v61, %v2238_v59  ;;  %v2164_v56 = vadd.f32 %v2163_v62, %v2050_v10  ;;  %v4071_v10 = vld [vmem:[%s5232_s6 + $0x170] ss:$8 sps:$4 sm:$0xff]   ;;  %v4080_v52 = vld [vmem:[%s5232_s6 + $0x154] ss:$8 sps:$4 sm:$0xff]  }
 0x30c   : > { %v2165_v53 = vpop.f32.mrf.mxu1 }
 0x30d   : > { %v2239_v1 = vmax.f32 %v2224_v63, %v2225_v31  ;;  %v2261_v0 = vmax.f32 %v2253_v54, 0.0  ;;  %v2166_v8 = vadd.f32 %v2165_v53, %v2052_v11  ;;  %v4078_v31 = vld [vmem:[%s5232_s6 + $0x150] ss:$8 sps:$4 sm:$0xff]  }
 0x30e   : > { %v2167_v3 = vpop.f32.mrf.mxu1 }
 0x30f   : > { %v2254_v4 = vadd.f32 %v5069_v61, %v2239_v1  ;;  %v2168_v40 = vadd.f32 %v2167_v3, %v5023_v47  ;;  %v4076_v47 = vld [vmem:[%s5232_s6 + $0x164] ss:$8 sps:$4 sm:$0xff]  }
 0x310   : > { %v2169_v33 = vpop.f32.mrf.mxu1  ;;  %v4083_v3 = vld [vmem:[%s5232_s6 + $0x144] ss:$8 sps:$4 sm:$0xff]  }
 0x311   : > { %v2262_v2 = vmax.f32 %v2254_v4, 0.0  ;;  %v2170_v27 = vadd.f32 %v2169_v33, %v5028_v58 }
 0x312   : > { %v2173_v55 = vpop.f32.mrf.mxu1 }
 0x313   : > { %v3717_v5 = vpack.c.bf16 %v2262_v2, %v2261_v0  ;;  %v2174_v6 = vadd.f32 %v2173_v55, %v2060_v12 }
 0x314   : > { %v2175_v7 = vpop.f32.mrf.mxu1 }
 0x315   : > { %3742 = vst [vmem:[#allocation4 + $0x8] sm:$0xff] %v3717_v5   ;;  %v2176_v9 = vadd.f32 %v2175_v7, %v2062_v13  ;;  %v2226_v26 = vmax.f32 %v2164_v56, %v2174_v6  ;;  %v4086_v6 = vld [vmem:[%s5232_s6 + $0x134] ss:$8 sps:$4 sm:$0xff]  }
 0x316   : > { %v2177_v57 = vpop.f32.mrf.mxu1 }
 0x317   : > { %v2227_v37 = vmax.f32 %v2166_v8, %v2176_v9  ;;  %v2178_v38 = vadd.f32 %v2177_v57, %v2064_v14  ;;  %v4084_v8 = vld [vmem:[%s5232_s6 + $0x130] ss:$8 sps:$4 sm:$0xff]  }
 0x318   : > { %v2179_v39 = vpop.f32.mrf.mxu1 }
 0x319   : > { %v2240_v41 = vmax.f32 %v2226_v26, %v2227_v37  ;;  %v2180_v42 = vadd.f32 %v2179_v39, %v5030_v15  ;;  %v2228_v44 = vmax.f32 %v2168_v40, %v2178_v38  ;;  %v4087_v39 = vld [vmem:[%s5232_s6 + $0x120] ss:$8 sps:$4 sm:$0xff]  }
 0x31a   : > { %v2183_v43 = vpop.f32.mrf.mxu1 }
 0x31b   : > { %v2229_v12 = vmax.f32 %v2170_v27, %v2180_v42  ;;  %v2255_v14 = vadd.f32 %v5069_v61, %v2240_v41  ;;  %v2184_v53 = vadd.f32 %v2183_v43, %v5032_v16  ;;  %v4081_v16 = vld [vmem:[%s5232_s6 + $0x140] ss:$8 sps:$4 sm:$0xff]   ;;  %v4093_v41 = vld [vmem:[%s5232_s6 + $0x114] ss:$8 sps:$4 sm:$0xff]  }
 0x31c   : > { %v2185_v11 = vpop.f32.mrf.mxu1  ;;  %v4062_v13 = vld [vmem:[#allocation4 + $0x8] sm:$0xff]  }
 0x31d   : > { %v2241_v46 = vmax.f32 %v2228_v44, %v2229_v12  ;;  %2705 = vmatprep.mubr.bf16.mxu0 %v4062_v13  ;;  %v2263_v50 = vmax.f32 %v2255_v14, 0.0  ;;  %v2186_v54 = vadd.f32 %v2185_v11, %v5034_v17  ;;  %v4096_v14 = vld [vmem:[%s5232_s6 + $0x104] ss:$8 sps:$4 sm:$0xff]  }
 0x31e   : > { %v2187_v58 = vpop.f32.mrf.mxu1  ;;  %2706 = vmatmul.mubr.bf16.vlgmr.msra.gmra.mxu0 %v4069_v45  ;;  %v4091_v45 = vld [vmem:[%s5232_s6 + $0x110] ss:$8 sps:$4 sm:$0xff]  }
 0x31f   : > { %v2256_v15 = vadd.f32 %v5069_v61, %v2241_v46  ;;  %2747 = vmatpush1.bf16.msra.mxu0 %v4071_v10  ;;  %v2188_v17 = vadd.f32 %v2187_v58, %v5036_v18 }
 0x320   : > { %v2189_v48 = vpop.f32.mrf.mxu1  ;;  %2748 = vmatprep.subr.bf16.mxu0 %v4076_v47 }
 0x321   : > { %v2264_v51 = vmax.f32 %v2256_v15, 0.0 }
 0x322   : > { %v2193_v59 = vpop.f32.mrf.mxu1 }
 0x323   : > { %v3722_v60 = vpack.c.bf16 %v2264_v51, %v2263_v50  ;;  %v2194_v62 = vadd.f32 %v2193_v59, %v5040_v20  ;;  %2749 = vmatpush1.bf16.msra.mxu0 %v4074_v49 }
 0x324   : > { %v2195_v63 = vpop.f32.mrf.mxu1  ;;  %2750 = vmatprep.subr.bf16.mxu0 %v4080_v52 }
 0x325   : > { %3743 = vst [vmem:[#allocation4 + $0x10] sm:$0xff] %v3722_v60   ;;  %v2196_v1 = vadd.f32 %v2195_v63, %v5042_v21  ;;  %v2230_v20 = vmax.f32 %v2184_v53, %v2194_v62  ;;  %v2190_v21 = vadd.f32 %v2189_v48, %v5038_v19 }
 0x326   : > { %v2197_v4 = vpop.f32.mrf.mxu1 }
 0x327   : > { %v2231_v33 = vmax.f32 %v2186_v54, %v2196_v1  ;;  %v2198_v0 = vadd.f32 %v2197_v4, %v5044_v22  ;;  %2751 = vmatpush1.bf16.msra.mxu0 %v4078_v31  ;;  %v4101_v54 = vld [vmem:[#allocation8 + $0x38] sm:$0xff]   ;;  %v4245_v1 = vmov 0.0   ;;  %v4103_v4 = vld [vmem:[#allocation8 + $0x28] sm:$0xff]  }
 0x328   : > { %v2199_v2 = vpop.f32.mrf.mxu1  ;;  %2752 = vmatprep.subr.bf16.mxu0 %v4083_v3  ;;  %3775 = vmatprep.subr.bf16.mxu1 %v4245_v1  ;;  %v4102_v3 = vld [vmem:[#allocation8 + $0x30] sm:$0xff]  }
 0x329   : > { %v2242_v55 = vmax.f32 %v2230_v20, %v2231_v33  ;;  %v2200_v5 = vadd.f32 %v2199_v2, %v5046_v23  ;;  %v2232_v22 = vmax.f32 %v2188_v17, %v2198_v0  ;;  %v4089_v23 = vld [vmem:[%s5232_s6 + $0x124] ss:$8 sps:$4 sm:$0xff]   ;;  %3776 = vmatpush3.bf16.msra.mxu1 %v4101_v54  ;;  %v4105_v20 = vld [vmem:[#allocation8 + $0x18] sm:$0xff]   ;;  %v4106_v33 = vld [vmem:[#allocation8 + $0x10] sm:$0xff]   ;;  %3791 = vmatprep.mubr.msk.bf16.mxu1 %vm4246_vm4, %v4245_v1 }
 0x32a   : > { %v2203_v7 = vpop.f32.mrf.mxu1  ;;  %3777 = vmatprep.subr.bf16.mxu1 %v4245_v1  ;;  %v4107_v0 = vld [vmem:[#allocation8 + $0x78] sm:$0xff]   ;;  %v4108_v2 = vld [vmem:[#allocation8 + $0x70] sm:$0xff]   ;;  %v4110_v17 = vld [vmem:[#allocation8 + $0x68] sm:$0xff]  }
 0x32b   : > { %v2233_v56 = vmax.f32 %v2190_v21, %v2200_v5  ;;  %2753 = vmatpush1.bf16.msra.mxu0 %v4081_v16  ;;  %v2257_v18 = vadd.f32 %v5069_v61, %v2242_v55  ;;  %v2204_v10 = vadd.f32 %v2203_v7, %v5048_v24  ;;  %v4094_v24 = vld [vmem:[%s5232_s6 + $0x100] ss:$8 sps:$4 sm:$0xff]   ;;  %v4113_v5 = vld [vmem:[#allocation8 + $0x58] sm:$0xff]  }
 0x32c   : > { %v2205_v9 = vpop.f32.mrf.mxu1  ;;  %v4070_v57 = vld [vmem:[#allocation4 + $0x10] sm:$0xff]   ;;  %2754 = vmatprep.subr.bf16.mxu0 %v4086_v6  ;;  %v4109_v16 = vld [vmem:[#allocation8 + $0x8] sm:$0xff]   ;;  %v4111_v21 = vld [vmem:[#allocation8 + $0x60] sm:$0xff]  }
 0x32d   : > { %v2243_v19 = vmax.f32 %v2232_v22, %v2233_v56  ;;  %2715 = vmatprep.mubr.bf16.mxu0 %v4070_v57  ;;  %v2265_v40 = vmax.f32 %v2257_v18, 0.0  ;;  %v2206_v11 = vadd.f32 %v2205_v9, %v5050_v28  ;;  %3778 = vmatpush3.bf16.msra.mxu1 %v4102_v3  ;;  %v4112_v55 = vld [vmem:[#allocation8] sm:$0xff]   ;;  %v4114_v6 = vld [vmem:[#allocation8 + $0x50] sm:$0xff]   ;;  %v4115_v7 = vld [vmem:[#allocation8 + $0x48] sm:$0xff]  }
 0x32e   : > { %v2207_v26 = vpop.f32.mrf.mxu1  ;;  %2716 = vmatmul.mubr.bf16.gmra.mxu0 %v4062_v13  ;;  %3779 = vmatprep.subr.bf16.mxu1 %v4245_v1  ;;  %v4116_v22 = vld [vmem:[#allocation8 + $0x40] sm:$0xff]  }
 0x32f   : > { %v2258_v37 = vadd.f32 %v5069_v61, %v2243_v19  ;;  %2755 = vmatpush1.bf16.msra.mxu0 %v4084_v8  ;;  %v2208_v28 = vadd.f32 %v2207_v26, %v5052_v25 }
 0x330   : > { %v2209_v38 = vpop.f32.mrf.mxu1  ;;  %2756 = vmatprep.subr.bf16.mxu0 %v4089_v23 }
 0x331   : > { %v2266_v27 = vmax.f32 %v2258_v37, 0.0  ;;  %3780 = vmatpush3.bf16.msra.mxu1 %v4103_v4 }
 0x332   : > { %v2213_v42 = vpop.f32.mrf.mxu1  ;;  %3781 = vmatprep.subr.bf16.mxu1 %v4245_v1 }
 0x333   : > { %v3727_v43 = vpack.c.bf16 %v2266_v27, %v2265_v40  ;;  %v2214_v44 = vadd.f32 %v2213_v42, %v5056_v30  ;;  %2757 = vmatpush1.bf16.msra.mxu0 %v4087_v39 }
 0x334   : > { %v2215_v12 = vpop.f32.mrf.mxu1  ;;  %2758 = vmatprep.subr.bf16.mxu0 %v4093_v41 }
 0x335   : > { %3744 = vst [vmem:[#allocation4 + $0x18] sm:$0xff] %v3727_v43   ;;  %v2216_v13 = vadd.f32 %v2215_v12, %v5058_v34  ;;  %v2234_v30 = vmax.f32 %v2204_v10, %v2214_v44  ;;  %v2210_v34 = vadd.f32 %v2209_v38, %v5054_v29 }
 0x336   : > { %v2217_v46 = vpop.f32.mrf.mxu1 }
 0x337   : > { %v2235_v47 = vmax.f32 %v2206_v11, %v2216_v13  ;;  %v2218_v58 = vadd.f32 %v2217_v46, %v5060_v35  ;;  %2759 = vmatpush1.bf16.msra.mxu0 %v4091_v45 }
 0x338   : > { %v2219_v15 = vpop.f32.mrf.mxu1  ;;  %2760 = vmatprep.subr.bf16.mxu0 %v4096_v14 }
 0x339   : > { %v2244_v48 = vmax.f32 %v2234_v30, %v2235_v47  ;;  %v2220_v49 = vadd.f32 %v2219_v15, %v5062_v36  ;;  %v2236_v50 = vmax.f32 %v2208_v28, %v2218_v58  ;;  %v4097_v36 = vld [vmem:[#allocation4 + $0x10] sm:$0xff]  }
 0x33b   : > { %v2237_v51 = vmax.f32 %v2210_v34, %v2220_v49  ;;  %2761 = vmatpush1.bf16.msra.mxu0 %v4094_v24  ;;  %v2259_v35 = vadd.f32 %v5069_v61, %v2244_v48 }
 0x33c   : > { %v4077_v52 = vld [vmem:[#allocation4 + $0x18] sm:$0xff]   ;;  %3801 = vmatprep.subr.bf16.mxu0 %v4245_v1 }
 0x33d   : > { %v2245_v59 = vmax.f32 %v2236_v50, %v2237_v51  ;;  %2725 = vmatprep.mubr.bf16.mxu0 %v4077_v52  ;;  %v2267_v62 = vmax.f32 %v2259_v35, 0.0  ;;  %v4098_v31 = vld [vmem:[#allocation4 + $0x18] sm:$0xff]  }
 0x33e   : > { %2726 = vmatmul.mubr.bf16.gmra.mxu0 %v4070_v57 }
 0x33f   : > { %v2260_v60 = vadd.f32 %v5069_v61, %v2245_v59  ;;  %v4100_v61 = vld [vmem:[#allocation4 + $0x28] sm:$0xff]  }
 0x341   : > { %v2268_v63 = vmax.f32 %v2260_v60, 0.0 }
 0x343   : > { %v3732_v25 = vpack.c.bf16 %v2268_v63, %v2267_v62  ;;  %v4247_v63 = vmov 65535  }
 0x345   : > { %3745 = vst [vmem:[#allocation4 + $0x20] sm:$0xff] %v3732_v25   ;;  %v2962_v25 = vsel %vm2960_vm5, 4294967295, %v4247_v63 }
 0x346   : > { %v2963_v54 = vsel %vm2961_vm6, %v2962_v25, 0 }
 0x34c   : > { %v4090_v29 = vld [vmem:[#allocation4 + $0x20] sm:$0xff]  }
 0x34d   : > { %2735 = vmatprep.mubr.bf16.mxu0 %v4090_v29  ;;  %v4099_v53 = vld [vmem:[#allocation4 + $0x20] sm:$0xff]  }
 0x34e   : > { %2736 = vmatmul.mubr.bf16.gmra.mxu0 %v4077_v52  ;;  %v3587_v52 = vld [vmem:[%s5233_s7] ss:$0 sm:$0xff] }
 0x34f   : > { %2778 = vmatprep.mubr.bf16.mxu0 %v4242_v32 }
 0x356   : > { %2779 = vmatmul.mubr.bf16.vlgmr.msra.gmra.mxu0 %v4097_v36 }
 0x357   : > { %2788 = vmatprep.mubr.bf16.mxu0 %v4242_v32  ;;  %3802 = vmatpush3.bf16.msra.mxu0 %v4107_v0 }
 0x358   : > { %3803 = vmatprep.subr.bf16.mxu0 %v4245_v1 }
 0x35b   : > { %3804 = vmatpush3.bf16.msra.mxu0 %v4108_v2 }
 0x35c   : > { %3805 = vmatprep.subr.bf16.mxu0 %v4245_v1 }
 0x35e   : > { %2789 = vmatmul.mubr.bf16.gmra.mxu0 %v4098_v31 }
 0x35f   : > { %2798 = vmatprep.mubr.bf16.mxu0 %v4242_v32  ;;  %3806 = vmatpush3.bf16.msra.mxu0 %v4110_v17 }
 0x360   : > { %3807 = vmatprep.subr.bf16.mxu0 %v4245_v1 }
 0x363   : > { %3808 = vmatpush3.bf16.msra.mxu0 %v4111_v21 }
 0x364   : > { %3809 = vmatprep.subr.bf16.mxu0 %v4245_v1 }
 0x366   : > { %2799 = vmatmul.mubr.bf16.gmra.mxu0 %v4099_v53 }
 0x367   : > { %2808 = vmatprep.mubr.bf16.mxu0 %v4242_v32  ;;  %v4104_v32 = vld [vmem:[#allocation8 + $0x20] sm:$0xff]   ;;  %3810 = vmatpush3.bf16.msra.mxu0 %v4113_v5 }
 0x368   : > { %3782 = vmatpush3.bf16.msra.mxu1 %v4104_v32  ;;  %3811 = vmatprep.subr.bf16.mxu0 %v4245_v1  ;;  %v2846_v5 = vld [vmem:[%s661_s14] sm:$0xff] }
 0x369   : > { %3783 = vmatprep.subr.bf16.mxu1 %v4245_v1 }
 0x36b   : > { %3812 = vmatpush3.bf16.msra.mxu0 %v4114_v6  ;;  %v2847_v6 = vld [vmem:[%s661_s14 + $0x8] sm:$0xff] }
 0x36c   : > { %3784 = vmatpush3.bf16.msra.mxu1 %v4105_v20  ;;  %3813 = vmatprep.subr.bf16.mxu0 %v4245_v1 }
 0x36d   : > { %3785 = vmatprep.subr.bf16.mxu1 %v4245_v1 }
 0x36e   : > { %2809 = vmatmul.mubr.bf16.gmra.mxu0 %v4100_v61  ;;  %v2849_v61 = vld [vmem:[%s5235_s9] sm:$0x3] }
 0x36f   : > { %3817 = vmatprep.mubr.msk.bf16.mxu0 %vm4246_vm4, %v4245_v1  ;;  %3814 = vmatpush3.bf16.msra.mxu0 %v4115_v7 }
 0x370   : > { %3786 = vmatpush3.bf16.msra.mxu1 %v4106_v33  ;;  %3815 = vmatprep.subr.bf16.mxu0 %v4245_v1  ;;  %v2965_v33 = vand.u32 %v2963_v54, %v2849_v61 }
 0x371   : > { %3787 = vmatprep.subr.bf16.mxu1 %v4245_v1 }
 0x373   : > { %3816 = vmatpush3.bf16.msra.mxu0 %v4116_v22 }
 0x374   : > { %3788 = vmatpush3.bf16.msra.mxu1 %v4109_v16 }
 0x375   : > { %3789 = vmatprep.subr.bf16.mxu1 %v4245_v1 }
 0x378   : > { %3790 = vmatpush3.bf16.msra.mxu1 %v4112_v55 }
 0x379   : > { %3795 = vmatprep.subr.bf16.mxu1 %v4245_v1 }
 0x3de   : > { %v2707_v56 = vpop.f32.mrf.mxu0 }
 0x3e0   : > { %v2709_v8 = vpop.f32.mrf.mxu0 }
 0x3e2   : > { %v2711_v9 = vpop.f32.mrf.mxu0 }
 0x3e4   : > { %v2713_v57 = vpop.f32.mrf.mxu0 }
 0x3ee   : > { %v2717_v18 = vpop.f32.mrf.mxu0 }
 0x3f0   : > { %v2719_v19 = vpop.f32.mrf.mxu0 }
 0x3f2   : > { %v2721_v23 = vpop.f32.mrf.mxu0 }
 0x3f4   : > { %v2723_v26 = vpop.f32.mrf.mxu0 }
 0x3fe   : > { %v2727_v37 = vpop.f32.mrf.mxu0 }
 0x400   : > { %v2729_v38 = vpop.f32.mrf.mxu0 }
 0x402   : > { %v5168_v39 = vpop.f32.mrf.mxu0 }
 0x404   : > { %v5170_v40 = vpop.f32.mrf.mxu0 }
 0x40e   : > { %v2737_v27 = vpop.f32.mrf.mxu0 }
 0x410   : > { %v2739_v41 = vpop.f32.mrf.mxu0 }
 0x412   : > { %v2741_v42 = vpop.f32.mrf.mxu0 }
 0x414   : > { %v5172_v43 = vpop.f32.mrf.mxu0 }
 0x416   : > { %v2780_v44 = vpop.f32.mrf.mxu0 }
 0x417   : > { %v2781_v46 = vadd.f32 %v2780_v44, %v2707_v56 }
 0x418   : > { %v2782_v12 = vpop.f32.mrf.mxu0 }
 0x419   : > { %v2783_v30 = vadd.f32 %v2782_v12, %v2709_v8 }
 0x41a   : > { %v2784_v45 = vpop.f32.mrf.mxu0 }
 0x41b   : > { %v2785_v48 = vadd.f32 %v2784_v45, %v2711_v9  ;;  %v4118_v45 = vld [vmem:[#allocation10 + $0x30] sm:$0xff]  }
 0x41c   : > { %v2786_v10 = vpop.f32.mrf.mxu0 }
 0x41d   : > { %v2787_v49 = vadd.f32 %v2786_v10, %v2713_v57  ;;  %v2848_v57 = vpack.c.bf16 %v2847_v6, %v2846_v5  ;;  %v4120_v10 = vld [vmem:[#allocation10 + $0x20] sm:$0xff]  }
 0x41e   : > { %v2790_v11 = vpop.f32.mrf.mxu0 }
 0x41f   : > { %v2791_v13 = vadd.f32 %v2790_v11, %v2717_v18  ;;  %v4121_v11 = vld [vmem:[#allocation10 + $0x18] sm:$0xff]  }
 0x420   : > { %v2792_v14 = vpop.f32.mrf.mxu0 }
 0x421   : > { %v2793_v47 = vadd.f32 %v2792_v14, %v2719_v19  ;;  %v2819_v15 = vmax.f32 %v2781_v46, %v2791_v13  ;;  %v4122_v13 = vld [vmem:[#allocation10 + $0x10] sm:$0xff]   ;;  %v4123_v14 = vld [vmem:[#allocation10 + $0x8] sm:$0xff]   ;;  %v4124_v46 = vld [vmem:[#allocation10] sm:$0xff]  }
 0x422   : > { %v2794_v58 = vpop.f32.mrf.mxu0 }
 0x423   : > { %v2820_v24 = vmax.f32 %v2783_v30, %v2793_v47  ;;  %v2795_v28 = vadd.f32 %v2794_v58, %v2721_v23 }
 0x424   : > { %v2796_v34 = vpop.f32.mrf.mxu0 }
 0x425   : > { %v2827_v50 = vmax.f32 %v2819_v15, %v2820_v24  ;;  %v2797_v51 = vadd.f32 %v2796_v34, %v2723_v26  ;;  %v2821_v59 = vmax.f32 %v2785_v48, %v2795_v28 }
 0x426   : > { %v2800_v35 = vpop.f32.mrf.mxu0 }
 0x427   : > { %v2822_v60 = vmax.f32 %v2787_v49, %v2797_v51  ;;  %v2838_v29 = vadd.f32 %v3587_v52, %v2827_v50  ;;  %v2801_v17 = vadd.f32 %v2800_v35, %v2727_v37  ;;  %v4117_v37 = vld [vmem:[#allocation10 + $0x38] sm:$0xff]  }
 0x428   : > { %v2802_v62 = vpop.f32.mrf.mxu0 }
 0x429   : > { %v2828_v36 = vmax.f32 %v2821_v59, %v2822_v60  ;;  %v2842_v4 = vmax.f32 %v2838_v29, 0.0  ;;  %v2803_v21 = vadd.f32 %v2802_v62, %v2729_v38 }
 0x42a   : > { %v2804_v31 = vpop.f32.mrf.mxu0 }
 0x42b   : > { %v2839_v53 = vadd.f32 %v3587_v52, %v2828_v36  ;;  %v2805_v18 = vadd.f32 %v2804_v31, %v5168_v39 }
 0x42c   : > { %v2806_v3 = vpop.f32.mrf.mxu0 }
 0x42d   : > { %v2843_v32 = vmax.f32 %v2839_v53, 0.0  ;;  %v2807_v19 = vadd.f32 %v2806_v3, %v5170_v40  ;;  %v3606_v53 = vld [vmem:[%s5238_s12] ss:$0 sm:$0xff] }
 0x42e   : > { %v2810_v20 = vpop.f32.mrf.mxu0 }
 0x42f   : > { %v2850_v0 = vpack.c.bf16 %v2843_v32, %v2842_v4  ;;  %v2811_v2 = vadd.f32 %v2810_v20, %v2737_v27 }
 0x430   : > { %v2812_v16 = vpop.f32.mrf.mxu0 }
 0x431   : > { %v2813_v55 = vadd.f32 %v2812_v16, %v2739_v41  ;;  %3792 = vmatmul.mubr.bf16.vlgmr.msra.gmra.mxu1 %v2850_v0  ;;  %v2823_v22 = vmax.f32 %v2801_v17, %v2811_v2 }
 0x432   : > { %v2814_v7 = vpop.f32.mrf.mxu0  ;;  %3796 = vmatpush3.bf16.msra.mxu1 %v2965_v33  ;;  %3797 = vmatprep.mubr.msk.bf16.mxu1 %vm4246_vm4, %v4245_v1 }
 0x433   : > { %v2824_v56 = vmax.f32 %v2803_v21, %v2813_v55  ;;  %v2815_v8 = vadd.f32 %v2814_v7, %v2741_v42  ;;  %3821 = vmatprep.subr.bf16.mxu1 %v4245_v1 }
 0x434   : > { %v2816_v9 = vpop.f32.mrf.mxu0 }
 0x435   : > { %v2829_v23 = vmax.f32 %v2823_v22, %v2824_v56  ;;  %v2817_v26 = vadd.f32 %v2816_v9, %v5172_v43  ;;  %v2825_v38 = vmax.f32 %v2805_v18, %v2815_v8  ;;  %v4119_v43 = vld [vmem:[#allocation10 + $0x28] sm:$0xff]  }
 0x437   : > { %v2826_v27 = vmax.f32 %v2807_v19, %v2817_v26  ;;  %v2840_v41 = vadd.f32 %v3587_v52, %v2829_v23 }
 0x439   : > { %v2830_v44 = vmax.f32 %v2825_v38, %v2826_v27  ;;  %3798 = vmatmul.mubr.msk.bf16.vlgmr.msra.gmra.mxu1 %vm2956_vm7, %v2848_v57  ;;  %v2844_v39 = vmax.f32 %v2840_v41, 0.0 }
 0x43a   : > { %3822 = vmatpush3.bf16.msra.mxu1 %v4117_v37  ;;  %3837 = vmatprep.mubr.msk.bf16.mxu1 %vm4246_vm4, %v4245_v1 }
 0x43b   : > { %v2841_v42 = vadd.f32 %v3587_v52, %v2830_v44  ;;  %3823 = vmatprep.subr.bf16.mxu1 %v4245_v1  ;;  %v3605_v52 = vld [vmem:[%s5236_s10] ss:$0 sm:$0xff] }
 0x43d   : > { %v2845_v12 = vmax.f32 %v2841_v42, 0.0 }
 0x43e   : > { %3824 = vmatpush3.bf16.msra.mxu1 %v4118_v45 }
 0x43f   : > { %v3008_v40 = vpack.c.bf16 %v2845_v12, %v2844_v39  ;;  %3825 = vmatprep.subr.bf16.mxu1 %v4245_v1 }
 0x441   : > { %3818 = vmatmul.mubr.bf16.vlgmr.msra.gmra.mxu0 %v3008_v40 }
 0x442   : > { %3826 = vmatpush3.bf16.msra.mxu1 %v4119_v43 }
 0x443   : > { %3827 = vmatprep.subr.bf16.mxu1 %v4245_v1 }
 0x446   : > { %3828 = vmatpush3.bf16.msra.mxu1 %v4120_v10 }
 0x447   : > { %3829 = vmatprep.subr.bf16.mxu1 %v4245_v1 }
 0x44a   : > { %3830 = vmatpush3.bf16.msra.mxu1 %v4121_v11 }
 0x44b   : > { %3831 = vmatprep.subr.bf16.mxu1 %v4245_v1 }
 0x44e   : > { %3832 = vmatpush3.bf16.msra.mxu1 %v4122_v13 }
 0x44f   : > { %3833 = vmatprep.subr.bf16.mxu1 %v4245_v1 }
 0x452   : > { %3834 = vmatpush3.bf16.msra.mxu1 %v4123_v14 }
 0x453   : > { %3835 = vmatprep.subr.bf16.mxu1 %v4245_v1 }
 0x456   : > { %3836 = vmatpush3.bf16.msra.mxu1 %v4124_v46 }
 0x4f1   : > { %v2949_v30 = vpop.f32.mrf.mxu1 }
 0x4f3   : > { %v3793_v47 = vpop.f32.mrf.mxu1 }
 0x4f5   : > { %v2952_v58 = vpop.f32.mrf.mxu1 }
 0x4f7   : > { %v3794_v15 = vpop.f32.mrf.mxu1 }
 0x4f9   : > { %v3001_v24 = vpop.f32.mrf.mxu1 }
 0x4fa   : > { %v3002_v49 = vadd.f32 %v3001_v24, %v2949_v30 }
 0x4fb   : > { %v3799_v28 = vpop.f32.mrf.mxu1 }
 0x4fd   : > { %v3004_v34 = vpop.f32.mrf.mxu1 }
 0x4fe   : > { %v3005_v1 = vadd.f32 %v3004_v34, %v2952_v58 }
 0x4ff   : > { %v3800_v48 = vpop.f32.mrf.mxu1 }
 0x501   : > { %v3108_v50 = vpop.f32.mrf.mxu0 }
 0x502   : > { %v3115_v51 = vadd.f32 %v3108_v50, %v3002_v49 }
 0x503   : > { %v3819_v35 = vpop.f32.mrf.mxu0 }
 0x504   : > { %v3124_v60 = vadd.f32 %v3605_v52, %v3115_v51 }
 0x505   : > { %v3111_v59 = vpop.f32.mrf.mxu0 }
 0x506   : > { %v3116_v62 = vadd.f32 %v3111_v59, %v3005_v1  ;;  %v3126_v29 = vmax.f32 %v3124_v60, 0.0 }
 0x507   : > { %v3820_v63 = vpop.f32.mrf.mxu0 }
 0x508   : > { %v3125_v25 = vadd.f32 %v3605_v52, %v3116_v62 }
 0x50a   : > { %v3127_v36 = vmax.f32 %v3125_v25, 0.0 }
 0x50c   : > { %v3128_v31 = vpack.c.bf16 %v3127_v36, %v3126_v29 }
 0x50e   : > { %3838 = vmatmul.mubr.bf16.vlgmr.msra.gmra.mxu1 %v3128_v31 }
 0x5ce   : > { %v3234_v61 = vpop.f32.mrf.mxu1 }
 0x5cf   : > { %v3235_v54 = vadd.f32 %v3606_v53, %v3234_v61 }
 0x5d0   : > { %v3839_v3 = vpop.f32.mrf.mxu1 }
 0x5d1   : > { %3241 = vst [vmem:[%s667_s29] sm:$0xff] %v3235_v54 }
 0x5d2   : > { %v3237_v4 = vpop.f32.mrf.mxu1 }
 0x5d3   : > { %v3238_v32 = vadd.f32 %v3606_v53, %v3237_v4 }
 0x5d4   : > { %v3840_v20 = vpop.f32.mrf.mxu1 }
 0x5d5   : > { %3242 = vst [vmem:[%s667_s29 + $0x8] sm:$0xff] %v3238_v32 }
 0x5d6 PF: > { %s5252_s27 = sld [smem:[#allocation13_spill]]  ;;  %s5254_s25 = smov %s4229_s26 }
 0x5d7   : > { %s5253_s23 = sld [smem:[#allocation14_spill]] }
 0x5dc   : > { %p22_p6 = scmp.ge.s32.totalorder %s5252_s27, 4  }
 0x5dd   : > { %s5255_s26 = smov %s5253_s23 }
 0x5de   :  { %24 = sbr.rel (!%p22_p6) target bundleno = 5 (0x5), region = 162 }
 0x5e3   :  { %3265 = vsyncpa [#allocation7], 1 }
 0x5e4   :  { %3267 = vsyncpa [#allocation7 + $0x1], 1 }
 0x5e5   :  { %3268 = vsyncpa [#allocation9], 1 }

</bundles_post_ra>
